<compile_context>
chip_gen: v7x
topology: tpu7x:2x2x1
jax: 0.10.0
libtpu: 0.0.40
codegen_flags: <defaults>
</compile_context>

<pallas_src>
import math
import jax
import jax.numpy as jnp
from jax.experimental import pallas as pl
from jax.experimental.pallas import tpu as pltpu


def _bayes_linear_kernel(eps_w_ref, x_ref, exp_psi_ref, mu_ref,
                         eps_b_ref, exp_bpsi_ref, bmu_ref, o_ref):
    # Block shapes:
    #   eps_w_ref   : (TB, I, TO)   per-sample weight noise (transposed layout)
    #   x_ref       : (TB, I)
    #   exp_psi_ref : (I, TO)       precomputed exp(weight_psi).T
    #   mu_ref      : (I, TO)       weight_mu.T
    #   eps_b_ref   : (TB, TO)
    #   exp_bpsi_ref: (1, TO)       precomputed exp(bias_psi)
    #   bmu_ref     : (1, TO)
    #   o_ref       : (TB, TO)
    x = x_ref[...]                                                   # (TB, I)

    # Shared mean path on the MXU: (TB, I) @ (I, TO)
    acc = jnp.dot(x, mu_ref[...], preferred_element_type=jnp.float32)

    # Per-sample noise path on the VPU:
    #   out_eps[b, o] = sum_i eps_w[b, i, o] * exp_psi[i, o] * x[b, i]
    acc = acc + jnp.sum(eps_w_ref[...] * exp_psi_ref[...] * x[:, :, None],
                        axis=1)

    # Per-sample bias: eps_b * exp(bias_psi) + bias_mu
    acc = acc + eps_b_ref[...] * exp_bpsi_ref[...] + bmu_ref[...]

    o_ref[...] = acc.astype(o_ref.dtype)


def _pick_tile(total, target, align):
    """Largest t <= target with t % align == 0 and total % t == 0, else full."""
    t = min(total, target)
    t -= t % align
    while t >= align:
        if total % t == 0:
            return t
        t -= align
    return total


def bayes_linear_imp(x, weight_mu, weight_psi, bias_mu, bias_psi, eps_w_t, eps_b):
    """Stochastic BayesLinearIMP forward.

    x:          (bs, in_f)
    weight_mu:  (out_f, in_f)     (PyTorch nn.Linear layout)
    weight_psi: (out_f, in_f)
    bias_mu:    (out_f,)
    bias_psi:   (out_f,)
    eps_w_t:    (bs, in_f, out_f)  per-sample weight noise, transposed layout
                (== eps_w.transpose(0, 2, 1) of the PyTorch layout; since the
                 noise is i.i.d., generate it directly in this layout in prod).
    eps_b:      (bs, out_f)
    returns:    (bs, out_f)
    """
    bs, in_f = x.shape
    out_f = weight_mu.shape[0]
    isz = jnp.dtype(x.dtype).itemsize

    # Hoisted transcendentals + transposed (I, O) weight staging (one-time cost,
    # negligible vs. streaming the (bs, I, O) noise tensor).
    exp_w_psi_t = jnp.exp(weight_psi).T          # (I, O)
    w_mu_t = weight_mu.T                         # (I, O)
    exp_b_psi2 = jnp.exp(bias_psi).reshape(1, out_f)
    b_mu2 = bias_mu.reshape(1, out_f)

    # Tile sizes: out-feature tile must be a multiple of 128 (lane-dense) or the
    # full extent; batch tile a multiple of 8 (sublane) or the full batch.
    TO = _pick_tile(out_f, 256, 128)
    target_bytes = 2 * 1024 * 1024               # ~2 MiB eps_w tiles
    row_bytes = max(in_f * TO * isz, 1)
    TB = _pick_tile(bs, max(8, target_bytes // row_bytes), 8)
    nb, no = bs // TB, out_f // TO

    # Rough VMEM budget (double-buffered inputs + f32 compute temps); clamp so it
    # is safe on v7x (64 MiB physical) while not starving v5e/v6e.
    block_bytes = (TB * in_f * TO + TB * in_f + 2 * in_f * TO
                   + 2 * TB * TO + 2 * TO) * isz
    est = 2 * block_bytes + 4 * TB * in_f * TO * 4
    vmem_limit = int(min(max(2 * est, 32 * 1024 * 1024), 64 * 1024 * 1024))

    out = pl.pallas_call(
        _bayes_linear_kernel,
        out_shape=jax.ShapeDtypeStruct((bs, out_f), x.dtype),
        grid=(nb, no),
        in_specs=[
            pl.BlockSpec((TB, in_f, TO), lambda b, o: (b, 0, o)),  # eps_w_t
            pl.BlockSpec((TB, in_f), lambda b, o: (b, 0)),         # x
            pl.BlockSpec((in_f, TO), lambda b, o: (0, o)),         # exp(weight_psi).T
            pl.BlockSpec((in_f, TO), lambda b, o: (0, o)),         # weight_mu.T
            pl.BlockSpec((TB, TO), lambda b, o: (b, o)),           # eps_b
            pl.BlockSpec((1, TO), lambda b, o: (0, o)),            # exp(bias_psi)
            pl.BlockSpec((1, TO), lambda b, o: (0, o)),            # bias_mu
        ],
        out_specs=pl.BlockSpec((TB, TO), lambda b, o: (b, o)),
        compiler_params=pltpu.CompilerParams(
            dimension_semantics=("parallel", "parallel"),
            vmem_limit_bytes=vmem_limit),
    )(eps_w_t, x, exp_w_psi_t, w_mu_t, eps_b, exp_b_psi2, b_mu2)
    return out


def bayes_linear_imp_deterministic(x, weight_mu, bias_mu):
    """Deterministic branch (F.linear): no noise stream, plain XLA matmul."""
    return x @ weight_mu.T + bias_mu[None, :]


def _run_case(key, bs, in_f, out_f, dtype=jnp.float32):
    k_wmu, k_wpsi, k_bmu, k_bpsi, k_x, k_ew, k_eb = jax.random.split(key, 7)
    stdv = 1.0 / math.sqrt(in_f)
    weight_mu = jax.random.uniform(k_wmu, (out_f, in_f), dtype, -stdv, stdv)
    weight_psi = jax.random.uniform(k_wpsi, (out_f, in_f), dtype, -6.0, -5.0)
    bias_mu = jax.random.uniform(k_bmu, (out_f,), dtype, -stdv, stdv)
    bias_psi = jax.random.uniform(k_bpsi, (out_f,), dtype, -6.0, -5.0)
    x = jax.random.normal(k_x, (bs, in_f), dtype)

    # PyTorch-layout noise (bs, O, I); transpose only for the numerical check
    # (production code would draw the i.i.d. noise directly in (bs, I, O)).
    eps_w = jax.random.normal(k_ew, (bs, out_f, in_f), dtype)
    eps_b = jax.random.normal(k_eb, (bs, out_f), dtype)
    eps_w_t = jnp.transpose(eps_w, (0, 2, 1))

    out = bayes_linear_imp(x, weight_mu, weight_psi, bias_mu, bias_psi,
                           eps_w_t, eps_b)
    out = jax.block_until_ready(out)

    # Pure-JAX reference of the PyTorch forward semantics.
    w_ref = eps_w * jnp.exp(weight_psi)[None] + weight_mu[None]
    ref = jnp.einsum("boi,bi->bo", w_ref, x) \
        + eps_b * jnp.exp(bias_psi)[None] + bias_mu[None]
    assert out.shape == (bs, out_f)
    assert jnp.allclose(out, ref, rtol=1e-4, atol=1e-4), \
        float(jnp.max(jnp.abs(out - ref)))

    # Deterministic branch: no zero-noise streaming, just F.linear semantics.
    out_det = jax.block_until_ready(
        bayes_linear_imp_deterministic(x, weight_mu, bias_mu))
    ref_det = x @ weight_mu.T + bias_mu[None]
    assert jnp.allclose(out_det, ref_det, rtol=1e-4, atol=1e-4)


if __name__ == "__main__":
    key = jax.random.PRNGKey(0)
    k1, k2 = jax.random.split(key)
    # Lane-aligned shapes (exercise the fast, unmasked-store path).
    _run_case(k1, bs=8, in_f=128, out_f=256)
    # Unaligned shapes (full-extent blocks, masked stores; still correct).
    _run_case(k2, bs=4, in_f=40, out_f=96)
    print("KERNEL_OK")
</pallas_src>

<mosaic_0001>
module attributes {stable_mosaic.version = 11 : i64} {
  func.func @_bayes_linear_kernel(%arg0: i32, %arg1: i32, %arg2: memref<8x128x256xf32, #tpu.memory_space<vmem>>, %arg3: memref<8x128xf32, #tpu.memory_space<vmem>>, %arg4: memref<128x256xf32, #tpu.memory_space<vmem>>, %arg5: memref<128x256xf32, #tpu.memory_space<vmem>>, %arg6: memref<8x256xf32, #tpu.memory_space<vmem>>, %arg7: memref<1x256xf32, #tpu.memory_space<vmem>>, %arg8: memref<1x256xf32, #tpu.memory_space<vmem>>, %arg9: memref<8x256xf32, #tpu.memory_space<vmem>>) attributes {dimension_semantics = [#tpu.dimension_semantics<parallel>, #tpu.dimension_semantics<parallel>], iteration_bounds = array<i64: 1, 1>, scalar_prefetch = 0 : i64, scratch_operands = 0 : i64, tpu.core_type = #tpu.core_type<tc>, window_params = [{transform_indices = @transform_0, window_bounds = array<i64: 8, 128, 256>}, {transform_indices = @transform_1, window_bounds = array<i64: 8, 128>}, {transform_indices = @transform_2, window_bounds = array<i64: 128, 256>}, {transform_indices = @transform_3, window_bounds = array<i64: 128, 256>}, {transform_indices = @transform_4, window_bounds = array<i64: 8, 256>}, {transform_indices = @transform_5, window_bounds = array<i64: 1, 256>}, {transform_indices = @transform_6, window_bounds = array<i64: 1, 256>}, {transform_indices = @transform_7, window_bounds = array<i64: 8, 256>}]} {
    %c0 = arith.constant 0 : index
    %c0_0 = arith.constant 0 : index
    %0 = vector.load %arg3[%c0, %c0_0] : memref<8x128xf32, #tpu.memory_space<vmem>>, vector<8x128xf32>
    %c0_1 = arith.constant 0 : index
    %c0_2 = arith.constant 0 : index
    %1 = vector.load %arg5[%c0_1, %c0_2] : memref<128x256xf32, #tpu.memory_space<vmem>>, vector<128x256xf32>
    %cst = arith.constant dense<0.000000e+00> : vector<8x256xf32>
    %2 = tpu.matmul %0, %1, %cst {dimension_numbers = #tpu.dot_dimension_numbers<[1], [0], [0], [1], [0, 0, 1, 1], [], []>} : vector<8x128xf32>, vector<128x256xf32>, vector<8x256xf32> -> vector<8x256xf32>
    %c0_3 = arith.constant 0 : index
    %c0_4 = arith.constant 0 : index
    %c0_5 = arith.constant 0 : index
    %3 = vector.load %arg2[%c0_3, %c0_4, %c0_5] : memref<8x128x256xf32, #tpu.memory_space<vmem>>, vector<8x128x256xf32>
    %c0_6 = arith.constant 0 : index
    %c0_7 = arith.constant 0 : index
    %4 = vector.load %arg4[%c0_6, %c0_7] : memref<128x256xf32, #tpu.memory_space<vmem>>, vector<128x256xf32>
    %5 = vector.shape_cast %4 : vector<128x256xf32> to vector<1x128x256xf32>
    %6 = vector.broadcast %5 : vector<1x128x256xf32> to vector<8x128x256xf32>
    %7 = arith.mulf %3, %6 : vector<8x128x256xf32>
    %8 = vector.shape_cast %0 : vector<8x128xf32> to vector<8x128x1xf32>
    %9 = vector.broadcast %8 : vector<8x128x1xf32> to vector<8x128x256xf32>
    %10 = arith.mulf %7, %9 : vector<8x128x256xf32>
    %cst_8 = arith.constant dense<0.000000e+00> : vector<8x256xf32>
    %11 = vector.multi_reduction <add>, %10, %cst_8 [1] : vector<8x128x256xf32> to vector<8x256xf32>
    %12 = arith.addf %2, %11 : vector<8x256xf32>
    %c0_9 = arith.constant 0 : index
    %c0_10 = arith.constant 0 : index
    %13 = vector.load %arg6[%c0_9, %c0_10] : memref<8x256xf32, #tpu.memory_space<vmem>>, vector<8x256xf32>
    %c0_11 = arith.constant 0 : index
    %c0_12 = arith.constant 0 : index
    %14 = vector.load %arg7[%c0_11, %c0_12] : memref<1x256xf32, #tpu.memory_space<vmem>>, vector<1x256xf32>
    %15 = vector.broadcast %14 : vector<1x256xf32> to vector<8x256xf32>
    %16 = arith.mulf %13, %15 : vector<8x256xf32>
    %17 = arith.addf %12, %16 : vector<8x256xf32>
    %c0_13 = arith.constant 0 : index
    %c0_14 = arith.constant 0 : index
    %18 = vector.load %arg8[%c0_13, %c0_14] : memref<1x256xf32, #tpu.memory_space<vmem>>, vector<1x256xf32>
    %19 = vector.broadcast %18 : vector<1x256xf32> to vector<8x256xf32>
    %20 = arith.addf %17, %19 : vector<8x256xf32>
    %c0_15 = arith.constant 0 : index
    %c0_16 = arith.constant 0 : index
    %21 = vector.load %arg9[%c0_15, %c0_16] : memref<8x256xf32, #tpu.memory_space<vmem>>, vector<8x256xf32>
    tpu.vector_store %arg9[%c0_15, %c0_16], %20 {strides = array<i32>} : memref<8x256xf32, #tpu.memory_space<vmem>>, vector<8x256xf32>,
    return
  }
  func.func @transform_0(%arg0: i32, %arg1: i32) -> (i32, i32, i32) {
    %c0_i32 = arith.constant 0 : i32
    %c0_i32_0 = arith.constant 0 : i32
    return %arg0, %c0_i32, %arg1 : i32, i32, i32
  }
  func.func @transform_1(%arg0: i32, %arg1: i32) -> (i32, i32) {
    %c0_i32 = arith.constant 0 : i32
    %c0_i32_0 = arith.constant 0 : i32
    return %arg0, %c0_i32 : i32, i32
  }
  func.func @transform_2(%arg0: i32, %arg1: i32) -> (i32, i32) {
    %c0_i32 = arith.constant 0 : i32
    %c0_i32_0 = arith.constant 0 : i32
    return %c0_i32, %arg1 : i32, i32
  }
  func.func @transform_3(%arg0: i32, %arg1: i32) -> (i32, i32) {
    %c0_i32 = arith.constant 0 : i32
    %c0_i32_0 = arith.constant 0 : i32
    return %c0_i32, %arg1 : i32, i32
  }
  func.func @transform_4(%arg0: i32, %arg1: i32) -> (i32, i32) {
    %c0_i32 = arith.constant 0 : i32
    return %arg0, %arg1 : i32, i32
  }
  func.func @transform_5(%arg0: i32, %arg1: i32) -> (i32, i32) {
    %c0_i32 = arith.constant 0 : i32
    %c0_i32_0 = arith.constant 0 : i32
    return %c0_i32, %arg1 : i32, i32
  }
  func.func @transform_6(%arg0: i32, %arg1: i32) -> (i32, i32) {
    %c0_i32 = arith.constant 0 : i32
    %c0_i32_0 = arith.constant 0 : i32
    return %c0_i32, %arg1 : i32, i32
  }
  func.func @transform_7(%arg0: i32, %arg1: i32) -> (i32, i32) {
    %c0_i32 = arith.constant 0 : i32
    return %arg0, %arg1 : i32, i32
  }
}

</mosaic_0001>

<bundles_post_ra>
// kernel: tpu_custom_call.1
= control target key start
LH: loop header
LB: loop body
LE: loop exit
PB: predicated region body
PF: predicated region fallthrough
CT: control target
= control target key end

     0   :  { %12 = vsyncpa [#allocation3], 0  ;;  %s3607_s0 = inlined_call_operand.hbm [shape: f32[8,128,256], index: 0, kind: input, shape index: {}]   ;;  %s3608_s1 = inlined_call_operand.hbm [shape: f32[8,128], index: 1, kind: input, shape index: {}]   ;;  %s3609_s2 = inlined_call_operand.hbm [shape: f32[128,256], index: 2, kind: input, shape index: {}]   ;;  %s3610_s3 = inlined_call_operand.hbm [shape: f32[128,256], index: 3, kind: input, shape index: {}]   ;;  %s3611_s4 = inlined_call_operand.hbm [shape: f32[8,256], index: 4, kind: input, shape index: {}]   ;;  %s3612_s5 = inlined_call_operand.vmem [shape: f32[1,256], index: 5, kind: input, shape index: {}]   ;;  %s3613_s6 = inlined_call_operand.vmem [shape: f32[1,256], index: 6, kind: input, shape index: {}]   ;;  %s3614_s7 = inlined_call_operand.hbm [shape: f32[8,256], index: 7, kind: output, shape index: {}]  }
   0x1   :  { %13 = vsyncpa [#allocation6], 0 }
   0x2   :  { %14 = vsyncpa [#allocation9], 0 }
   0x3   :  { %15 = vsyncpa [#allocation4], 0  ;;  %s2170_s24 = smov [#allocation5]   ;;  %s2030_s28 = scalar_lea.hbm %s3608_s1, 128 }
   0x4   :  { %s34_s25 = sshll.u32 %s2170_s24, 4  ;;  %p2031_p0 = scmp.ne.s32.totalorder %s3608_s1, %s2030_s28  ;;  %s35_s25 = int_to_ptr.vmem [resolvable:$true] %s34_s25 }
   0x5   :  { %p2034_p1 = scmp.lt.u32.totalorder %s2030_s28, %s3608_s1 }
   0x7   :  { %p2036_p2 = pnand %p2034_p1, %p2031_p0 }
   0x9   :  { %2039 = shalt.err (!%p2036_p2)
}
   0xa   :  { %s2040_s10 = scalar_lea.vmem %s35_s25, 128  ;;  %p2045_p4 = scmp.lt.s32.totalorder %s35_s25, %s35_s25 }
   0xb   :  { %p2041_p3 = scmp.ne.s32.totalorder %s35_s25, %s2040_s10  ;;  %p2046_p5 = scmp.lt.s32.totalorder %s2040_s10, %s2040_s10 }
   0xd   :  { %p2047_p6 = por %p2046_p5, %p2045_p4 }
   0xf   :  { %p2048_p7 = pnand %p2047_p6, %p2041_p3 }
  0x11   :  { %2051 = shalt.err (!%p2048_p7)
}
  0x12   :  { %37 = dma.hbm_to_vmem [thread:$0]  %s3608_s1, 128, %s35_s25, [#allocation6]  }
  0x13   :  { %s2171_s13 = smov [#allocation8]   ;;  %s2172_s15 = smov [#allocation2]  }
  0x14   :  { %s55_s14 = sshll.u32 %s2171_s13, 4  ;;  %s21_s16 = sshll.u32 %s2172_s15, 4  ;;  %s56_s14 = int_to_ptr.vmem [resolvable:$true] %s55_s14  ;;  %s22_s16 = int_to_ptr.vmem [resolvable:$true] %s21_s16 }
  0x15   :  { %s2052_s19 = scalar_lea.hbm %s3610_s3, 4096 }
  0x16   :  { %p2053_p8 = scmp.ne.s32.totalorder %s3610_s3, %s2052_s19  ;;  %p2056_p9 = scmp.lt.u32.totalorder %s2052_s19, %s3610_s3 }
  0x18   :  { %p2058_p10 = pnand %p2056_p9, %p2053_p8 }
  0x1a   :  { %2061 = shalt.err (!%p2058_p10)
}
  0x1b   :  { %s2062_s1 = scalar_lea.vmem %s56_s14, 4096  ;;  %p2067_p12 = scmp.lt.s32.totalorder %s56_s14, %s56_s14 }
  0x1c   :  { %p2063_p11 = scmp.ne.s32.totalorder %s56_s14, %s2062_s1  ;;  %p2068_p13 = scmp.lt.s32.totalorder %s2062_s1, %s2062_s1 }
  0x1e   :  { %p2069_p0 = por %p2068_p13, %p2067_p12 }
  0x20   :  { %p2070_p1 = pnand %p2069_p0, %p2063_p11 }
  0x22   :  { %2073 = shalt.err (!%p2070_p1)
}
  0x23   :  { %s2173_s24 = smov 256   ;;  %s2174_s25 = smov 16  }
  0x24   :  { %61 = dma.hbm_to_vmem [thread:$0]  %s3610_s3, 4096, %s56_s14, [#allocation9], %s2173_s24, %s2173_s24, %s2174_s25  }
  0x25   :  { %s2074_s30 = scalar_lea.hbm %s3607_s0, 32768 }
  0x26   :  { %p2075_p2 = scmp.ne.s32.totalorder %s3607_s0, %s2074_s30  ;;  %p2078_p3 = scmp.lt.u32.totalorder %s2074_s30, %s3607_s0 }
  0x28   :  { %p2080_p4 = pnand %p2078_p3, %p2075_p2 }
  0x2a   :  { %2083 = shalt.err (!%p2080_p4)
}
  0x2b   :  { %s2084_s12 = scalar_lea.vmem %s22_s16, 32768  ;;  %p2089_p6 = scmp.lt.s32.totalorder %s22_s16, %s22_s16 }
  0x2c   :  { %p2085_p5 = scmp.ne.s32.totalorder %s22_s16, %s2084_s12  ;;  %p2090_p7 = scmp.lt.s32.totalorder %s2084_s12, %s2084_s12 }
  0x2e   :  { %p2091_p8 = por %p2090_p7, %p2089_p6 }
  0x30   :  { %p2092_p9 = pnand %p2091_p8, %p2085_p5 }
  0x32   :  { %2095 = shalt.err (!%p2092_p9)
}
  0x33   :  { %27 = dma.hbm_to_vmem [thread:$0]  %s3607_s0, 32768, %s22_s16, [#allocation3], %s2173_s24, %s2173_s24, %s2174_s25  }
  0x34   :  { %s2175_s14 = smov [#allocation7]   ;;  %s2176_s17 = smov [#allocation10]  }
  0x35   :  { %s43_s15 = sshll.u32 %s2175_s14, 4  ;;  %s68_s18 = sshll.u32 %s2176_s17, 4  ;;  %s44_s15 = int_to_ptr.vmem [resolvable:$true] %s43_s15  ;;  %s69_s18 = int_to_ptr.vmem [resolvable:$true] %s68_s18 }
  0x36   :  { %s2096_s21 = scalar_lea.hbm %s3609_s2, 4096 }
  0x37   :  { %p2097_p10 = scmp.ne.s32.totalorder %s3609_s2, %s2096_s21  ;;  %p2100_p11 = scmp.lt.u32.totalorder %s2096_s21, %s3609_s2 }
  0x39   :  { %p2102_p12 = pnand %p2100_p11, %p2097_p10 }
  0x3b   :  { %2105 = shalt.err (!%p2102_p12)
}
  0x3c   :  { %s2106_s0 = scalar_lea.vmem %s44_s15, 4096  ;;  %p2111_p0 = scmp.lt.s32.totalorder %s44_s15, %s44_s15 }
  0x3d   :  { %p2107_p13 = scmp.ne.s32.totalorder %s44_s15, %s2106_s0  ;;  %p2112_p1 = scmp.lt.s32.totalorder %s2106_s0, %s2106_s0 }
  0x3f   :  { %p2113_p2 = por %p2112_p1, %p2111_p0 }
  0x41   :  { %p2114_p3 = pnand %p2113_p2, %p2107_p13 }
  0x43   :  { %2117 = shalt.err (!%p2114_p3)
}
  0x44   :  { %49 = dma.hbm_to_vmem [thread:$0]  %s3609_s2, 4096, %s44_s15, [#allocation6], %s2173_s24, %s2173_s24, %s2174_s25  }
  0x45   :  { %s2118_s30 = scalar_lea.hbm %s3611_s4, 256 }
  0x46   :  { %p2119_p4 = scmp.ne.s32.totalorder %s3611_s4, %s2118_s30  ;;  %p2122_p5 = scmp.lt.u32.totalorder %s2118_s30, %s3611_s4 }
  0x48   :  { %p2124_p6 = pnand %p2122_p5, %p2119_p4 }
  0x4a   :  { %2127 = shalt.err (!%p2124_p6)
}
  0x4b   :  { %s2128_s12 = scalar_lea.vmem %s69_s18, 256  ;;  %p2133_p8 = scmp.lt.s32.totalorder %s69_s18, %s69_s18 }
  0x4c   :  { %p2129_p7 = scmp.ne.s32.totalorder %s69_s18, %s2128_s12  ;;  %p2134_p9 = scmp.lt.s32.totalorder %s2128_s12, %s2128_s12 }
  0x4e   :  { %p2135_p10 = por %p2134_p9, %p2133_p8 }
  0x50   :  { %p2136_p11 = pnand %p2135_p10, %p2129_p7 }
  0x52   :  { %2139 = shalt.err (!%p2136_p11)
}
  0x53   :  { %71 = dma.hbm_to_vmem [thread:$0]  %s3611_s4, 256, %s69_s18, [#allocation9]  }
  0x54   :  { %2162 = dma.done.wait [#allocation3], 32768  }
  0x55   :  { %2163 = vsyncadd [#allocation3], 4294934528 }
  0x56   :  { %2164 = dma.done.wait [#allocation6], 4224  }
  0x57   :  { %2165 = vsyncadd [#allocation6], 4294963072 }
  0x58   :  { %2166 = dma.done.wait [#allocation9], 4352  }
  0x59   :  { %2167 = vsyncadd [#allocation9], 4294962944  ;;  %v668_v0 = vlaneseq  ;;  %v2290_v5 = vld [vmem:[#allocation5] sm:$0xff]  ;;  %v93_v13 = vld [vmem:[#allocation8 + $0x8] sm:$0xff]  ;;  %vm1812_vm0 = vcmask 1041409   ;;  %vm1814_vm1 = vcmask 1042434  }
  0x5a   :  { %v95_v14 = vld [vmem:[#allocation8 + $0x18] sm:$0xff]  ;;  %v92_v15 = vld [vmem:[#allocation8] sm:$0xff]  ;;  %v94_v17 = vld [vmem:[#allocation8 + $0x10] sm:$0xff]  ;;  %vm1816_vm2 = vcmask 1043459   ;;  %vm1818_vm3 = vcmask 1044484   ;;  %vm1820_vm4 = vcmask 1045509  }
  0x5b   :  { %v669_v1 = vshrl.u32 %v668_v0, 7  ;;  %v1957_v16 = vpack.c.bf16 %v95_v14, %v93_v13  ;;  %v1959_v19 = vpack.c.bf16 %v94_v17, %v92_v15  ;;  %v97_v21 = vld [vmem:[#allocation8 + $0x28] sm:$0xff]  ;;  %v99_v22 = vld [vmem:[#allocation8 + $0x38] sm:$0xff]  ;;  %v96_v23 = vld [vmem:[#allocation8 + $0x20] sm:$0xff]  ;;  %vm1822_vm5 = vcmask 1046534   ;;  %s2178_s13 = smov [#allocation11]  }
  0x5c   :  { %v1961_v24 = vpack.c.bf16 %v99_v22, %v97_v21  ;;  %v98_v25 = vld [vmem:[#allocation8 + $0x30] sm:$0xff]  ;;  %v101_v28 = vld [vmem:[#allocation8 + $0x48] sm:$0xff]  ;;  %v103_v29 = vld [vmem:[#allocation8 + $0x58] sm:$0xff]  ;;  %vm1824_vm6 = vcmask 1047559   ;;  %s1946_s14 = sshll.u32 %s2178_s13, 4  ;;  %s1947_s14 = int_to_ptr.vmem [resolvable:$true] %s1946_s14 }
  0x5d   :  { %v2288_v2 = vsub.s32 0, %v669_v1  ;;  %v804_v3 = vsub.s32 2, %v669_v1  ;;  %v871_v4 = vsub.s32 3, %v669_v1  ;;  %v938_v6 = vsub.s32 4, %v669_v1  ;;  %1958 = vmatprep.subr.bf16.mxu0 %v1957_v16  ;;  %v100_v30 = vld [vmem:[#allocation8 + $0x40] sm:$0xff]  ;;  %v102_v31 = vld [vmem:[#allocation8 + $0x50] sm:$0xff]  ;;  %p2145_p13 = scmp.lt.s32.totalorder %s1947_s14, %s1947_s14 }
  0x5e   :  { %v1005_v11 = vsub.s32 5, %v669_v1  ;;  %v1072_v18 = vsub.s32 6, %v669_v1  ;;  %1960 = vmatpush1.bf16.msra.mxu0 %v1959_v19  ;;  %v1139_v26 = vsub.s32 7, %v669_v1  ;;  %v1963_v27 = vpack.c.bf16 %v98_v25, %v96_v23  ;;  %v105_v36 = vld [vmem:[#allocation8 + $0x68] sm:$0xff]  ;;  %v107_v37 = vld [vmem:[#allocation8 + $0x78] sm:$0xff]  ;;  %v104_v39 = vld [vmem:[#allocation8 + $0x60] sm:$0xff] }
  0x5f   :  { %3685 = vst [vmem:[#allocation16_spill] sm:$0xff] %v2288_v2  ;;  %v671_v7 = vrot.slane %v2290_v5, %v2288_v2  ;;  %v2295_v8 = vrot.slane %v2290_v5, %v804_v3  ;;  %v2298_v9 = vrot.slane %v2290_v5, %v871_v4  ;;  %v2301_v10 = vrot.slane %v2290_v5, %v938_v6  ;;  %v106_v40 = vld [vmem:[#allocation8 + $0x70] sm:$0xff]  ;;  %v109_v42 = vld [vmem:[#allocation8 + $0x88] sm:$0xff]  ;;  %v111_v43 = vld [vmem:[#allocation8 + $0x98] sm:$0xff] }
  0x60   :  { %v2304_v12 = vrot.slane %v2290_v5, %v1005_v11  ;;  %v2307_v20 = vrot.slane %v2290_v5, %v1072_v18  ;;  %1962 = vmatprep.subr.bf16.mxu0 %v1961_v24  ;;  %v2310_v32 = vrot.slane %v2290_v5, %v1139_v26  ;;  %v2312_v33 = vsub.s32 1, %v669_v1  ;;  %v108_v46 = vld [vmem:[#allocation8 + $0x80] sm:$0xff]  ;;  %v110_v47 = vld [vmem:[#allocation8 + $0x90] sm:$0xff]  ;;  %v113_v48 = vld [vmem:[#allocation8 + $0xa8] sm:$0xff] }
  0x61   :  { %3686 = vst [vmem:[#allocation17_spill] sm:$0xff] %v2301_v10  ;;  %681 = vbcast.lane.b32.xlu1 %v671_v7, 272  ;;  %673 = vbcast.lane.b32.xlu0 %v671_v7, 256  ;;  %v1965_v34 = vpack.c.bf16 %v103_v29, %v101_v28  ;;  %v1967_v35 = vpack.c.bf16 %v102_v31, %v100_v30  ;;  %v115_v49 = vld [vmem:[#allocation8 + $0xb8] sm:$0xff]  ;;  %v112_v52 = vld [vmem:[#allocation8 + $0xa0] sm:$0xff]  ;;  %v114_v53 = vld [vmem:[#allocation8 + $0xb0] sm:$0xff] }
  0x62   :  { %3687 = vst [vmem:[#allocation18_spill] sm:$0xff] %v2307_v20  ;;  %3688 = vst [vmem:[#allocation19_spill] sm:$0xff] %v2310_v32  ;;  %1964 = vmatpush1.bf16.msra.mxu0 %v1963_v27  ;;  %v1969_v38 = vpack.c.bf16 %v107_v37, %v105_v36  ;;  %v738_v41 = vrot.slane %v2290_v5, %v2312_v33  ;;  %v1971_v44 = vpack.c.bf16 %v106_v40, %v104_v39  ;;  %v117_v54 = vld [vmem:[#allocation8 + $0xc8] sm:$0xff]  ;;  %v119_v55 = vld [vmem:[#allocation8 + $0xd8] sm:$0xff]  ;;  %v2177_v3 = vmov 0.0  }
  0x63   :  { %3689 = vst [vmem:[#allocation20_spill] sm:$0xff] %v2312_v33  ;;  %1966 = vmatprep.subr.bf16.mxu0 %v1965_v34  ;;  %v1973_v45 = vpack.c.bf16 %v111_v43, %v109_v42  ;;  %v1975_v50 = vpack.c.bf16 %v110_v47, %v108_v46  ;;  %v1977_v51 = vpack.c.bf16 %v115_v49, %v113_v48  ;;  %v116_v58 = vld [vmem:[#allocation8 + $0xc0] sm:$0xff]  ;;  %v118_v59 = vld [vmem:[#allocation8 + $0xd0] sm:$0xff]  ;;  %v121_v60 = vld [vmem:[#allocation8 + $0xe8] sm:$0xff] }
  0x64   :  { %v1979_v56 = vpack.c.bf16 %v114_v53, %v112_v52  ;;  %v1981_v57 = vpack.c.bf16 %v119_v55, %v117_v54  ;;  %v123_v61 = vld [vmem:[#allocation8 + $0xf8] sm:$0xff]  ;;  %v1983_v62 = vpack.c.bf16 %v118_v59, %v116_v58  ;;  %v120_v0 = vld [vmem:[#allocation8 + $0xe0] sm:$0xff]  ;;  %v122_v1 = vld [vmem:[#allocation8 + $0xf0] sm:$0xff]  ;;  %1899 = vmatprep.mubr.f32.mxu0 %v2177_v3 }
  0x65   :  { %685 = vbcast.lane.b32.xlu1 %v671_v7, 280  ;;  %677 = vbcast.lane.b32.xlu0 %v671_v7, 264  ;;  %v1985_v63 = vpack.c.bf16 %v123_v61, %v121_v60  ;;  %v1987_v4 = vpack.c.bf16 %v122_v1, %v120_v0  ;;  %v128_v16 = vld [vmem:[#allocation2 + $0x20] sm:$0xff]  ;;  %v129_v17 = vld [vmem:[#allocation2 + $0x28] sm:$0xff]  ;;  %v2367_v19 = vld [vmem:[#allocation7 + $0x28] sm:$0xff] }
  0x66   :  { %1968 = vmatpush1.bf16.msra.mxu0 %v1967_v35  ;;  %v2365_v18 = vld [vmem:[#allocation7 + $0x20] sm:$0xff]  ;;  %v124_v21 = vld [vmem:[#allocation2] sm:$0xff]  ;;  %v2373_v24 = vld [vmem:[#allocation7 + $0x8] sm:$0xff] }
  0x67   :  { %1970 = vmatprep.subr.bf16.mxu0 %v1969_v38  ;;  %v2369_v22 = vld [vmem:[#allocation7] sm:$0xff]  ;;  %3696 = vst [vmem:[#allocation27_spill] sm:$0xff] %v2373_v24  ;;  %v131_v25 = vld [vmem:[#allocation2 + $0x38] sm:$0xff]  ;;  %v2377_v27 = vld [vmem:[#allocation7 + $0x38] sm:$0xff] }
  0x68   :  { %3695 = vst [vmem:[#allocation26_spill] sm:$0xff] %v2369_v22  ;;  %v125_v23 = vld [vmem:[#allocation2 + $0x8] sm:$0xff]  ;;  %v2375_v26 = vld [vmem:[#allocation7 + $0x30] sm:$0xff]  ;;  %3698 = vst [vmem:[#allocation29_spill] sm:$0xff] %v2377_v27  ;;  %v2416_v58 = vmul.f32 %v2369_v22, %v124_v21 }
  0x69   :  { %693 = vbcast.lane.b32.xlu1 %v671_v7, 296  ;;  %689 = vbcast.lane.b32.xlu0 %v671_v7, 288  ;;  %3697 = vst [vmem:[#allocation28_spill] sm:$0xff] %v2375_v26  ;;  %v126_v28 = vld [vmem:[#allocation2 + $0x10] sm:$0xff]  ;;  %v2379_v29 = vld [vmem:[#allocation7 + $0x10] sm:$0xff]  ;;  %v2381_v31 = vld [vmem:[#allocation7 + $0x18] sm:$0xff] }
  0x6a   :  { %1972 = vmatpush1.bf16.msra.mxu0 %v1971_v44  ;;  %v127_v30 = vld [vmem:[#allocation2 + $0x18] sm:$0xff]  ;;  %3699 = vst [vmem:[#allocation30_spill] sm:$0xff] %v2381_v31  ;;  %v134_v34 = vld [vmem:[#allocation2 + $0x50] sm:$0xff]  ;;  %v2385_v37 = vld [vmem:[#allocation7 + $0x58] sm:$0xff]  ;;  %v414_v21 = vmul.f32 %v2379_v29, %v126_v28 }
  0x6b   :  { %1974 = vmatprep.subr.bf16.mxu0 %v1973_v45  ;;  %v135_v35 = vld [vmem:[#allocation2 + $0x58] sm:$0xff]  ;;  %3701 = vst [vmem:[#allocation32_spill] sm:$0xff] %v2385_v37  ;;  %v132_v38 = vld [vmem:[#allocation2 + $0x40] sm:$0xff]  ;;  %v2387_v39 = vld [vmem:[#allocation7 + $0x40] sm:$0xff] }
  0x6c   :  { %v2383_v36 = vld [vmem:[#allocation7 + $0x50] sm:$0xff]  ;;  %v133_v42 = vld [vmem:[#allocation2 + $0x48] sm:$0xff]  ;;  %v2393_v43 = vld [vmem:[#allocation7 + $0x48] sm:$0xff]  ;;  %v2456_v32 = vmul.f32 %v2387_v39, %v132_v38 }
  0x6d   :  { %701 = vbcast.lane.b32.xlu1 %v671_v7, 312  ;;  %697 = vbcast.lane.b32.xlu0 %v671_v7, 304  ;;  %3700 = vst [vmem:[#allocation31_spill] sm:$0xff] %v2383_v36  ;;  %3704 = vst [vmem:[#allocation35_spill] sm:$0xff] %v2393_v43  ;;  %v138_v44 = vld [vmem:[#allocation2 + $0x70] sm:$0xff]  ;;  %v139_v45 = vld [vmem:[#allocation2 + $0x78] sm:$0xff]  ;;  %v2450_v28 = vmul.f32 %v2383_v36, %v134_v34 }
  0x6e   :  { %1976 = vmatpush1.bf16.msra.mxu0 %v1975_v50  ;;  %v2395_v46 = vld [vmem:[#allocation7 + $0x70] sm:$0xff]  ;;  %v2397_v47 = vld [vmem:[#allocation7 + $0x78] sm:$0xff]  ;;  %v137_v49 = vld [vmem:[#allocation2 + $0x68] sm:$0xff] }
  0x6f   :  { %1978 = vmatprep.subr.bf16.mxu0 %v1977_v51  ;;  %3705 = vst [vmem:[#allocation36_spill] sm:$0xff] %v2395_v46  ;;  %3706 = vst [vmem:[#allocation37_spill] sm:$0xff] %v2397_v47  ;;  %v136_v48 = vld [vmem:[#allocation2 + $0x60] sm:$0xff]  ;;  %v2399_v50 = vld [vmem:[#allocation7 + $0x60] sm:$0xff]  ;;  %v2464_v20 = vmul.f32 %v2395_v46, %v138_v44 }
  0x70   :  { %3707 = vst [vmem:[#allocation38_spill] sm:$0xff] %v2399_v50  ;;  %v2401_v51 = vld [vmem:[#allocation7 + $0x68] sm:$0xff]  ;;  %v143_v53 = vld [vmem:[#allocation2 + $0x98] sm:$0xff]  ;;  %v2405_v55 = vld [vmem:[#allocation7 + $0x98] sm:$0xff] }
  0x71   :  { %709 = vbcast.lane.b32.xlu1 %v671_v7, 328  ;;  %705 = vbcast.lane.b32.xlu0 %v671_v7, 320  ;;  %3708 = vst [vmem:[#allocation39_spill] sm:$0xff] %v2401_v51  ;;  %v142_v52 = vld [vmem:[#allocation2 + $0x90] sm:$0xff]  ;;  %v2403_v54 = vld [vmem:[#allocation7 + $0x90] sm:$0xff]  ;;  %3710 = vst [vmem:[#allocation41_spill] sm:$0xff] %v2405_v55 }
  0x72   :  { %1980 = vmatpush1.bf16.msra.mxu0 %v1979_v56  ;;  %3709 = vst [vmem:[#allocation40_spill] sm:$0xff] %v2403_v54  ;;  %v2410_v56 = vmul.f32 %v2365_v18, %v128_v16  ;;  %v140_v59 = vld [vmem:[#allocation2 + $0x80] sm:$0xff]  ;;  %v141_v60 = vld [vmem:[#allocation2 + $0x88] sm:$0xff]  ;;  %v147_v0 = vld [vmem:[#allocation2 + $0xb8] sm:$0xff]  ;;  %v2480_v44 = vmul.f32 %v2403_v54, %v142_v52 }
  0x73   :  { %1982 = vmatprep.subr.bf16.mxu0 %v1981_v57  ;;  %v2413_v57 = vmul.f32 %v2367_v19, %v129_v17  ;;  %v2418_v61 = vld [vmem:[#allocation7 + $0x80] sm:$0xff]  ;;  %v2422_v1 = vld [vmem:[#allocation7 + $0xb0] sm:$0xff]  ;;  %v2424_v3 = vld [vmem:[#allocation7 + $0xb8] sm:$0xff]  ;;  %v2433_v17 = vmul.f32 %v2377_v27, %v131_v25  ;;  %v415_v25 = vmul.f32 %v2381_v31, %v127_v30  ;;  %3717 = vst [vmem:[#allocation48_spill] sm:$0xff] %v2450_v28 }
  0x74   :  { %3711 = vst [vmem:[#allocation42_spill] sm:$0xff] %v2418_v61  ;;  %v144_v2 = vld [vmem:[#allocation2 + $0xa0] sm:$0xff]  ;;  %3720 = vst [vmem:[#allocation51_spill] sm:$0xff] %v2464_v20  ;;  %v2467_v30 = vmul.f32 %v2397_v47, %v139_v45  ;;  %v2471_v34 = vld [vmem:[#allocation7 + $0xc8] sm:$0xff]  ;;  %v2483_v45 = vmul.f32 %v2405_v55, %v143_v53  ;;  %v2499_v52 = vmul.f32 %v2424_v3, %v147_v0 }
  0x75   :  { %717 = vbcast.lane.b32.xlu1 %v671_v7, 344  ;;  %713 = vbcast.lane.b32.xlu0 %v671_v7, 336  ;;  %3714 = vst [vmem:[#allocation45_spill] sm:$0xff] %v2433_v17  ;;  %v148_v17 = vld [vmem:[#allocation2 + $0xc0] sm:$0xff]  ;;  %v155_v38 = vld [vmem:[#allocation2 + $0xf8] sm:$0xff]  ;;  %3724 = vst [vmem:[#allocation55_spill] sm:$0xff] %v2480_v44 }
  0x76   :  { %1984 = vmatpush1.bf16.msra.mxu0 %v1983_v62  ;;  %v2420_v62 = vld [vmem:[#allocation7 + $0x88] sm:$0xff]  ;;  %3721 = vst [vmem:[#allocation52_spill] sm:$0xff] %v2467_v30  ;;  %3725 = vst [vmem:[#allocation56_spill] sm:$0xff] %v2483_v45  ;;  %v2485_v30 = vld [vmem:[#allocation7 + $0xf0] sm:$0xff] }
  0x77   :  { %1986 = vmatprep.subr.bf16.mxu0 %v1985_v63  ;;  %3712 = vst [vmem:[#allocation43_spill] sm:$0xff] %v2420_v62  ;;  %v146_v63 = vld [vmem:[#allocation2 + $0xb0] sm:$0xff]  ;;  %v2487_v20 = vld [vmem:[#allocation7 + $0xf8] sm:$0xff]  ;;  %3729 = vst [vmem:[#allocation60_spill] sm:$0xff] %v2499_v52 }
  0x78   :  { %v152_v28 = vld [vmem:[#allocation2 + $0xe0] sm:$0xff]  ;;  %v153_v45 = vld [vmem:[#allocation2 + $0xe8] sm:$0xff]  ;;  %v159_v52 = vld [vmem:[#allocation2 + $0x118] sm:$0xff] }
  0x79   :  { %725 = vbcast.lane.b32.xlu1 %v671_v7, 360  ;;  %721 = vbcast.lane.b32.xlu0 %v671_v7, 352 }
  0x7a   :  { %1988 = vmatpush1.bf16.msra.mxu0 %v1987_v4  ;;  %v2427_v4 = vmul.f32 %v2373_v24, %v125_v23  ;;  %v150_v23 = vld [vmem:[#allocation2 + $0xd0] sm:$0xff] }
  0x7d   :  { %733 = vbcast.lane.b32.xlu1 %v671_v7, 376  ;;  %729 = vbcast.lane.b32.xlu0 %v671_v7, 368 }
  0x7e   :  { %1900 = vmatmul.mubr.f32.vlgmr.msra.gmra.mrb[0].mxu0 %v2290_v5 }
  0x81   :  { %744 = vbcast.lane.b32.xlu1 %v738_v41, 264  ;;  %740 = vbcast.lane.b32.xlu0 %v738_v41, 256 }
  0x85   :  { %752 = vbcast.lane.b32.xlu1 %v738_v41, 280  ;;  %748 = vbcast.lane.b32.xlu0 %v738_v41, 272 }
  0x89   :  { %760 = vbcast.lane.b32.xlu1 %v738_v41, 296  ;;  %756 = vbcast.lane.b32.xlu0 %v738_v41, 288 }
  0x8d   :  { %768 = vbcast.lane.b32.xlu1 %v738_v41, 312  ;;  %764 = vbcast.lane.b32.xlu0 %v738_v41, 304 }
  0x91   :  { %776 = vbcast.lane.b32.xlu1 %v738_v41, 328  ;;  %772 = vbcast.lane.b32.xlu0 %v738_v41, 320 }
  0x95   :  { %784 = vbcast.lane.b32.xlu1 %v738_v41, 344  ;;  %780 = vbcast.lane.b32.xlu0 %v738_v41, 336 }
  0x99   :  { %792 = vbcast.lane.b32.xlu1 %v738_v41, 360  ;;  %788 = vbcast.lane.b32.xlu0 %v738_v41, 352 }
  0x9d   :  { %800 = vbcast.lane.b32.xlu1 %v738_v41, 376  ;;  %796 = vbcast.lane.b32.xlu0 %v738_v41, 368 }
  0xa1   :  { %811 = vbcast.lane.b32.xlu1 %v2295_v8, 264  ;;  %807 = vbcast.lane.b32.xlu0 %v2295_v8, 256 }
  0xa5   :  { %819 = vbcast.lane.b32.xlu1 %v2295_v8, 280  ;;  %815 = vbcast.lane.b32.xlu0 %v2295_v8, 272 }
  0xa9   :  { %827 = vbcast.lane.b32.xlu1 %v2295_v8, 296  ;;  %823 = vbcast.lane.b32.xlu0 %v2295_v8, 288 }
  0xad   :  { %835 = vbcast.lane.b32.xlu1 %v2295_v8, 312  ;;  %831 = vbcast.lane.b32.xlu0 %v2295_v8, 304 }
  0xb1   :  { %843 = vbcast.lane.b32.xlu1 %v2295_v8, 328  ;;  %839 = vbcast.lane.b32.xlu0 %v2295_v8, 320 }
  0xb5   :  { %851 = vbcast.lane.b32.xlu1 %v2295_v8, 344  ;;  %847 = vbcast.lane.b32.xlu0 %v2295_v8, 336 }
  0xb9   :  { %859 = vbcast.lane.b32.xlu1 %v2295_v8, 360  ;;  %855 = vbcast.lane.b32.xlu0 %v2295_v8, 352 }
  0xbd   :  { %867 = vbcast.lane.b32.xlu1 %v2295_v8, 376  ;;  %863 = vbcast.lane.b32.xlu0 %v2295_v8, 368 }
  0xc1   :  { %878 = vbcast.lane.b32.xlu1 %v2298_v9, 264  ;;  %874 = vbcast.lane.b32.xlu0 %v2298_v9, 256 }
  0xc5   :  { %886 = vbcast.lane.b32.xlu1 %v2298_v9, 280  ;;  %882 = vbcast.lane.b32.xlu0 %v2298_v9, 272 }
  0xc9   :  { %894 = vbcast.lane.b32.xlu1 %v2298_v9, 296  ;;  %890 = vbcast.lane.b32.xlu0 %v2298_v9, 288 }
  0xcd   :  { %902 = vbcast.lane.b32.xlu1 %v2298_v9, 312  ;;  %898 = vbcast.lane.b32.xlu0 %v2298_v9, 304 }
  0xd1   :  { %910 = vbcast.lane.b32.xlu1 %v2298_v9, 328  ;;  %906 = vbcast.lane.b32.xlu0 %v2298_v9, 320 }
  0xd3   :  { %v2343_v5 = vpop.permute.xlu1 %681  ;;  %v2345_v6 = vpop.permute.xlu0 %673 }
  0xd5   :  { %918 = vbcast.lane.b32.xlu1 %v2298_v9, 344  ;;  %914 = vbcast.lane.b32.xlu0 %v2298_v9, 336 }
  0xd7   :  { %v2349_v7 = vpop.permute.xlu1 %685  ;;  %v2351_v8 = vpop.permute.xlu0 %677 }
  0xd8   :  { %3690 = vst [vmem:[#allocation21_spill] sm:$0xff] %v2349_v7  ;;  %v149_v7 = vld [vmem:[#allocation2 + $0xc8] sm:$0xff] }
  0xd9   :  { %926 = vbcast.lane.b32.xlu1 %v2298_v9, 360  ;;  %922 = vbcast.lane.b32.xlu0 %v2298_v9, 352 }
  0xdb   :  { %v2355_v11 = vpop.permute.xlu1 %693  ;;  %v2357_v13 = vpop.permute.xlu0 %689 }
  0xdc   :  { %3691 = vst [vmem:[#allocation22_spill] sm:$0xff] %v2355_v11  ;;  %3692 = vst [vmem:[#allocation23_spill] sm:$0xff] %v2357_v13  ;;  %v151_v11 = vld [vmem:[#allocation2 + $0xd8] sm:$0xff] }
  0xdd   :  { %934 = vbcast.lane.b32.xlu1 %v2298_v9, 376  ;;  %930 = vbcast.lane.b32.xlu0 %v2298_v9, 368  ;;  %v130_v9 = vld [vmem:[#allocation2 + $0x30] sm:$0xff]  ;;  %v2444_v13 = vld [vmem:[#allocation7 + $0xd0] sm:$0xff] }
  0xde   :  { %v2430_v16 = vmul.f32 %v2375_v26, %v130_v9  ;;  %v2446_v9 = vld [vmem:[#allocation7 + $0xd8] sm:$0xff] }
  0xdf   :  { %v2361_v14 = vpop.permute.xlu1 %701  ;;  %v2363_v15 = vpop.permute.xlu0 %697  ;;  %v2519_v0 = vmul.f32 %v2446_v9, %v151_v11  ;;  %v1206_v11 = vmul.f32 %v2351_v8, %v414_v21 }
  0xe0   :  { %3693 = vst [vmem:[#allocation24_spill] sm:$0xff] %v2361_v14  ;;  %3694 = vst [vmem:[#allocation25_spill] sm:$0xff] %v2363_v15  ;;  %v2440_v14 = vld [vmem:[#allocation7 + $0xa8] sm:$0xff] }
  0xe1   :  { %945 = vbcast.lane.b32.xlu1 %v2301_v10, 264  ;;  %941 = vbcast.lane.b32.xlu0 %v2301_v10, 256  ;;  %3713 = vst [vmem:[#allocation44_spill] sm:$0xff] %v2430_v16  ;;  %v2461_v16 = vmul.f32 %v2393_v43, %v133_v42  ;;  %v2477_v42 = vmul.f32 %v2401_v51, %v137_v49  ;;  %3735 = vst [vmem:[#allocation66_spill] sm:$0xff] %v2519_v0 }
  0xe2   :  { %v2496_v49 = vmul.f32 %v2422_v1, %v146_v63  ;;  %v2516_v63 = vmul.f32 %v2444_v13, %v150_v23  ;;  %v162_v23 = vld [vmem:[#allocation2 + $0x130] sm:$0xff]  ;;  %v1207_v0 = vmul.f32 %v2351_v8, %v415_v25  ;;  %v447_v8 = vmul.f32 %v2381_v31, %v159_v52  ;;  %v171_v31 = vld [vmem:[#allocation2 + $0x178] sm:$0xff] }
  0xe3   :  { %v2389_v40 = vpop.permute.xlu1 %709  ;;  %v2391_v41 = vpop.permute.xlu0 %705  ;;  %3719 = vst [vmem:[#allocation50_spill] sm:$0xff] %v2461_v16  ;;  %3723 = vst [vmem:[#allocation54_spill] sm:$0xff] %v2477_v42  ;;  %v2490_v16 = vmul.f32 %v2418_v61, %v140_v59  ;;  %v2505_v42 = vld [vmem:[#allocation7 + $0xe0] sm:$0xff] }
  0xe4   :  { %3702 = vst [vmem:[#allocation33_spill] sm:$0xff] %v2389_v40  ;;  %3703 = vst [vmem:[#allocation34_spill] sm:$0xff] %v2391_v41  ;;  %v145_v40 = vld [vmem:[#allocation2 + $0xa8] sm:$0xff] }
  0xe5   :  { %953 = vbcast.lane.b32.xlu1 %v2301_v10, 280  ;;  %949 = vbcast.lane.b32.xlu0 %v2301_v10, 272  ;;  %v2438_v41 = vld [vmem:[#allocation7 + $0xa0] sm:$0xff]  ;;  %3726 = vst [vmem:[#allocation57_spill] sm:$0xff] %v2490_v16  ;;  %3728 = vst [vmem:[#allocation59_spill] sm:$0xff] %v2496_v49 }
  0xe6   :  { %v2510_v59 = vmul.f32 %v2438_v41, %v144_v2  ;;  %3734 = vst [vmem:[#allocation65_spill] sm:$0xff] %v2516_v63  ;;  %v2535_v63 = vmul.f32 %v2487_v20, %v155_v38  ;;  %v166_v38 = vld [vmem:[#allocation2 + $0x150] sm:$0xff] }
  0xe7   :  { %v2436_v33 = vpop.permute.xlu1 %717  ;;  %v2442_v15 = vpop.permute.xlu0 %713 }
  0xe8   :  { %3715 = vst [vmem:[#allocation46_spill] sm:$0xff] %v2436_v33  ;;  %3716 = vst [vmem:[#allocation47_spill] sm:$0xff] %v2442_v15  ;;  %v2453_v33 = vmul.f32 %v2385_v37, %v135_v35  ;;  %v2458_v15 = vld [vmem:[#allocation7 + $0xc0] sm:$0xff]  ;;  %v154_v35 = vld [vmem:[#allocation2 + $0xf0] sm:$0xff] }
  0xe9   :  { %961 = vbcast.lane.b32.xlu1 %v2301_v10, 296  ;;  %957 = vbcast.lane.b32.xlu0 %v2301_v10, 288  ;;  %3732 = vst [vmem:[#allocation63_spill] sm:$0xff] %v2510_v59  ;;  %v2522_v49 = vmul.f32 %v2458_v15, %v148_v17  ;;  %v2530_v2 = vmul.f32 %v2485_v30, %v154_v35  ;;  %3739 = vst [vmem:[#allocation70_spill] sm:$0xff] %v2535_v63  ;;  %v167_v63 = vld [vmem:[#allocation2 + $0x158] sm:$0xff] }
  0xea   :  { %3718 = vst [vmem:[#allocation49_spill] sm:$0xff] %v2453_v33  ;;  %v2474_v33 = vmul.f32 %v2399_v50, %v136_v48  ;;  %v2493_v48 = vmul.f32 %v2420_v62, %v141_v60  ;;  %v2513_v60 = vmul.f32 %v2440_v14, %v145_v40  ;;  %v157_v40 = vld [vmem:[#allocation2 + $0x108] sm:$0xff]  ;;  %v2538_v17 = vmul.f32 %v2505_v42, %v152_v28  ;;  %v164_v28 = vld [vmem:[#allocation2 + $0x140] sm:$0xff] }
  0xeb   :  { %v2501_v44 = vpop.permute.xlu1 %725  ;;  %v2503_v53 = vpop.permute.xlu0 %721  ;;  %3736 = vst [vmem:[#allocation67_spill] sm:$0xff] %v2522_v49  ;;  %3738 = vst [vmem:[#allocation69_spill] sm:$0xff] %v2530_v2  ;;  %v161_v49 = vld [vmem:[#allocation2 + $0x128] sm:$0xff] }
  0xec   :  { %3722 = vst [vmem:[#allocation53_spill] sm:$0xff] %v2474_v33  ;;  %3727 = vst [vmem:[#allocation58_spill] sm:$0xff] %v2493_v48  ;;  %v2507_v33 = vld [vmem:[#allocation7 + $0xe8] sm:$0xff]  ;;  %v2525_v48 = vmul.f32 %v2471_v34, %v149_v7  ;;  %v163_v7 = vld [vmem:[#allocation2 + $0x138] sm:$0xff] }
  0xed   :  { %3730 = vst [vmem:[#allocation61_spill] sm:$0xff] %v2501_v44  ;;  %3731 = vst [vmem:[#allocation62_spill] sm:$0xff] %v2503_v53  ;;  %v158_v44 = vld [vmem:[#allocation2 + $0x110] sm:$0xff]  ;;  %v156_v53 = vld [vmem:[#allocation2 + $0x100] sm:$0xff]  ;;  %969 = vbcast.lane.b32.xlu1 %v2301_v10, 312  ;;  %965 = vbcast.lane.b32.xlu0 %v2301_v10, 304  ;;  %v2543_v35 = vmul.f32 %v2507_v33, %v153_v45  ;;  %v445_v45 = vmul.f32 %v2373_v24, %v157_v40 }
  0xee   :  { %3733 = vst [vmem:[#allocation64_spill] sm:$0xff] %v2513_v60  ;;  %3737 = vst [vmem:[#allocation68_spill] sm:$0xff] %v2525_v48  ;;  %v160_v48 = vld [vmem:[#allocation2 + $0x120] sm:$0xff]  ;;  %v446_v21 = vmul.f32 %v2379_v29, %v158_v44  ;;  %v444_v25 = vmul.f32 %v2369_v22, %v156_v53  ;;  %v169_v44 = vld [vmem:[#allocation2 + $0x168] sm:$0xff]  ;;  %v451_v52 = vmul.f32 %v2377_v27, %v163_v7 }
  0xef   :  { %3740 = vst [vmem:[#allocation71_spill] sm:$0xff] %v2538_v17  ;;  %v2540_v60 = vpop.permute.xlu1 %733  ;;  %3742 = vst [vmem:[#allocation73_spill] sm:$0xff] %v2543_v35  ;;  %v2545_v2 = vpop.permute.xlu0 %729  ;;  %v1204_v17 = vmul.f32 %v2345_v6, %v2416_v58  ;;  %v450_v35 = vmul.f32 %v2375_v26, %v162_v23  ;;  %v168_v10 = vld [vmem:[#allocation2 + $0x160] sm:$0xff]  ;;  %v448_v53 = vmul.f32 %v2365_v18, %v160_v48  ;;  %v170_v40 = vld [vmem:[#allocation2 + $0x170] sm:$0xff] }
  0xf0   :  { %3741 = vst [vmem:[#allocation72_spill] sm:$0xff] %v2540_v60  ;;  %3743 = vst [vmem:[#allocation74_spill] sm:$0xff] %v2545_v2  ;;  %v1205_v60 = vmul.f32 %v2345_v6, %v2427_v4  ;;  %v165_v2 = vld [vmem:[#allocation2 + $0x148] sm:$0xff]  ;;  %v449_v58 = vmul.f32 %v2367_v19, %v161_v49  ;;  %v454_v6 = vmul.f32 %v2383_v36, %v166_v38  ;;  %v172_v49 = vld [vmem:[#allocation2 + $0x180] sm:$0xff] }
  0xf1   :  { %1012 = vbcast.lane.b32.xlu1 %v2304_v12, 264  ;;  %1008 = vbcast.lane.b32.xlu0 %v2304_v12, 256  ;;  %v1460_v59 = vadd.f32 %v1206_v11, %v1204_v17  ;;  %v455_v4 = vmul.f32 %v2385_v37, %v167_v63  ;;  %v452_v24 = vmul.f32 %v2387_v39, %v164_v28  ;;  %v174_v17 = vld [vmem:[#allocation2 + $0x190] sm:$0xff]  ;;  %v175_v38 = vld [vmem:[#allocation2 + $0x198] sm:$0xff]  ;;  %v173_v28 = vld [vmem:[#allocation2 + $0x188] sm:$0xff] }
  0xf2   :  { %v1481_v16 = vadd.f32 %v1207_v0, %v1205_v60  ;;  %v453_v22 = vmul.f32 %v2393_v43, %v165_v2  ;;  %v2566_v7 = vmul.f32 %v2399_v50, %v168_v10  ;;  %v2569_v48 = vmul.f32 %v2401_v51, %v169_v44  ;;  %v3744_v36 = vld [vmem:[#allocation18_spill] sm:$0xff] }
  0xf3   :  { %v745_v23 = vpop.permute.xlu1 %744  ;;  %v741_v26 = vpop.permute.xlu0 %740  ;;  %v1208_v60 = vmul.f32 %v2343_v5, %v2410_v56  ;;  %v1209_v63 = vmul.f32 %v2343_v5, %v2413_v57  ;;  %v458_v10 = vmul.f32 %v2395_v46, %v170_v40  ;;  %v459_v56 = vmul.f32 %v2397_v47, %v171_v31  ;;  %v3745_v5 = vld [vmem:[#allocation44_spill] sm:$0xff]  ;;  %v3746_v57 = vld [vmem:[#allocation21_spill] sm:$0xff] }
  0xf4   :  { %v1238_v0 = vmul.f32 %v745_v23, %v446_v21  ;;  %v1239_v11 = vmul.f32 %v745_v23, %v447_v8  ;;  %v1236_v2 = vmul.f32 %v741_v26, %v444_v25  ;;  %v1237_v37 = vmul.f32 %v741_v26, %v445_v45  ;;  %v3747_v31 = vld [vmem:[#allocation45_spill] sm:$0xff] }
  0xf5   :  { %1079 = vbcast.lane.b32.xlu1 %v3744_v36, 264  ;;  %1075 = vbcast.lane.b32.xlu0 %v3744_v36, 256  ;;  %v1461_v44 = vadd.f32 %v1460_v59, %v1208_v60  ;;  %v1482_v51 = vadd.f32 %v1481_v16, %v1209_v63  ;;  %v2580_v50 = vmul.f32 %v2418_v61, %v172_v49  ;;  %v176_v16 = vld [vmem:[#allocation2 + $0x1a0] sm:$0xff]  ;;  %v177_v59 = vld [vmem:[#allocation2 + $0x1a8] sm:$0xff]  ;;  %v179_v61 = vld [vmem:[#allocation2 + $0x1b8] sm:$0xff] }
  0xf6   :  { %v1210_v21 = vmul.f32 %v3746_v57, %v3745_v5  ;;  %v2585_v26 = vmul.f32 %v2403_v54, %v174_v17  ;;  %v2588_v25 = vmul.f32 %v2405_v55, %v175_v38  ;;  %v2591_v45 = vmul.f32 %v2420_v62, %v173_v28  ;;  %v178_v5 = vld [vmem:[#allocation2 + $0x1b0] sm:$0xff]  ;;  %v3748_v54 = vld [vmem:[#allocation19_spill] sm:$0xff] }
  0xf7   :  { %v753_v8 = vpop.permute.xlu1 %752  ;;  %v749_v23 = vpop.permute.xlu0 %748  ;;  %v1211_v40 = vmul.f32 %v3746_v57, %v3747_v31  ;;  %v1502_v49 = vadd.f32 %v1238_v0, %v1236_v2  ;;  %v1523_v60 = vadd.f32 %v1239_v11, %v1237_v37  ;;  %v2598_v55 = vmul.f32 %v2438_v41, %v176_v16  ;;  %v181_v2 = vld [vmem:[#allocation2 + $0x1c8] sm:$0xff]  ;;  %v3750_v57 = vld [vmem:[#allocation50_spill] sm:$0xff] }
  0xf8   :  { %v1242_v63 = vmul.f32 %v753_v8, %v450_v35  ;;  %v1243_v47 = vmul.f32 %v753_v8, %v451_v52  ;;  %v1240_v46 = vmul.f32 %v749_v23, %v448_v53  ;;  %v1241_v17 = vmul.f32 %v749_v23, %v449_v58  ;;  %v180_v58 = vld [vmem:[#allocation2 + $0x1c0] sm:$0xff]  ;;  %v183_v16 = vld [vmem:[#allocation2 + $0x1d8] sm:$0xff] }
  0xf9   :  { %1142 = vbcast.lane.b32.xlu1 %v3748_v54, 256  ;;  %1016 = vbcast.lane.b32.xlu0 %v2304_v12, 272  ;;  %v1462_v38 = vadd.f32 %v1461_v44, %v1210_v21  ;;  %v1483_v28 = vadd.f32 %v1482_v51, %v1211_v40  ;;  %v2601_v62 = vmul.f32 %v2440_v14, %v177_v59  ;;  %v3749_v51 = vld [vmem:[#allocation23_spill] sm:$0xff] }
  0xfa   :  { %v1503_v0 = vadd.f32 %v1502_v49, %v1240_v46  ;;  %v1524_v37 = vadd.f32 %v1523_v60, %v1241_v17  ;;  %v2604_v52 = vmul.f32 %v2422_v1, %v178_v5  ;;  %v2607_v53 = vmul.f32 %v2424_v3, %v179_v61  ;;  %v182_v46 = vld [vmem:[#allocation2 + $0x1d0] sm:$0xff] }
  0xfb   :  { %v761_v35 = vpop.permute.xlu1 %760  ;;  %v757_v11 = vpop.permute.xlu0 %756  ;;  %v1212_v44 = vmul.f32 %v3749_v51, %v2456_v32  ;;  %v1213_v21 = vmul.f32 %v3749_v51, %v3750_v57  ;;  %v2616_v5 = vmul.f32 %v2458_v15, %v180_v58  ;;  %v2619_v32 = vmul.f32 %v2471_v34, %v181_v2  ;;  %v186_v51 = vld [vmem:[#allocation2 + $0x1f0] sm:$0xff] }
  0xfc   :  { %v1246_v8 = vmul.f32 %v761_v35, %v454_v6  ;;  %v1247_v23 = vmul.f32 %v761_v35, %v455_v4  ;;  %v1504_v59 = vadd.f32 %v1503_v0, %v1242_v63  ;;  %v1525_v31 = vadd.f32 %v1524_v37, %v1243_v47  ;;  %v185_v63 = vld [vmem:[#allocation2 + $0x1e8] sm:$0xff]  ;;  %v3753_v37 = vld [vmem:[#allocation49_spill] sm:$0xff] }
  0xfd   :  { %v1244_v40 = vmul.f32 %v757_v11, %v452_v24  ;;  %v1245_v49 = vmul.f32 %v757_v11, %v453_v22  ;;  %1083 = vbcast.lane.b32.xlu1 %v3744_v36, 272  ;;  %v1463_v61 = vadd.f32 %v1462_v38, %v1212_v44  ;;  %v1484_v60 = vadd.f32 %v1483_v28, %v1213_v21  ;;  %v184_v24 = vld [vmem:[#allocation2 + $0x1e0] sm:$0xff]  ;;  %v3751_v38 = vld [vmem:[#allocation48_spill] sm:$0xff]  ;;  %v3752_v28 = vld [vmem:[#allocation22_spill] sm:$0xff] }
  0xfe   :  { %1146 = vbcast.lane.b32.xlu0 %v3748_v54, 264  ;;  %v2622_v47 = vmul.f32 %v2444_v13, %v182_v46  ;;  %v2625_v22 = vmul.f32 %v2446_v9, %v183_v16  ;;  %v1214_v0 = vmul.f32 %v3752_v28, %v3751_v38  ;;  %v1215_v11 = vmul.f32 %v3752_v28, %v3753_v37  ;;  %v187_v44 = vld [vmem:[#allocation2 + $0x1f8] sm:$0xff]  ;;  %v188_v28 = vld [vmem:[#allocation2 + $0x200] sm:$0xff] }
  0xff   :  { %v1505_v6 = vadd.f32 %v1504_v59, %v1244_v40  ;;  %v1526_v4 = vadd.f32 %v1525_v31, %v1245_v49  ;;  %v769_v17 = vpop.permute.xlu1 %768  ;;  %v765_v35 = vpop.permute.xlu0 %764  ;;  %v2636_v40 = vmul.f32 %v2505_v42, %v184_v24 }
 0x100   :  { %v1250_v58 = vmul.f32 %v769_v17, %v458_v10  ;;  %v1251_v2 = vmul.f32 %v769_v17, %v459_v56  ;;  %v1248_v46 = vmul.f32 %v765_v35, %v2566_v7  ;;  %v1249_v59 = vmul.f32 %v765_v35, %v2569_v48  ;;  %v3756_v35 = vld [vmem:[#allocation54_spill] sm:$0xff] }
 0x101   :  { %v1506_v57 = vadd.f32 %v1505_v6, %v1246_v8  ;;  %v1527_v21 = vadd.f32 %v1526_v4, %v1247_v23  ;;  %1150 = vbcast.lane.b32.xlu1 %v3748_v54, 272  ;;  %v1464_v16 = vadd.f32 %v1463_v61, %v1214_v0  ;;  %v1485_v31 = vadd.f32 %v1484_v60, %v1215_v11  ;;  %v190_v61 = vld [vmem:[#allocation2 + $0x210] sm:$0xff]  ;;  %v191_v60 = vld [vmem:[#allocation2 + $0x218] sm:$0xff]  ;;  %v189_v0 = vld [vmem:[#allocation2 + $0x208] sm:$0xff] }
 0x102   :  { %1020 = vbcast.lane.b32.xlu0 %v2304_v12, 280  ;;  %v2639_v10 = vmul.f32 %v2507_v33, %v185_v63  ;;  %v2642_v7 = vmul.f32 %v2485_v30, %v186_v51  ;;  %v2645_v48 = vmul.f32 %v2487_v20, %v187_v44  ;;  %v3754_v6 = vld [vmem:[#allocation53_spill] sm:$0xff] }
 0x103   :  { %v1507_v56 = vadd.f32 %v1506_v57, %v1248_v46  ;;  %v1528_v49 = vadd.f32 %v1527_v21, %v1249_v59  ;;  %v777_v8 = vpop.permute.xlu1 %776  ;;  %v773_v23 = vpop.permute.xlu0 %772  ;;  %v3755_v4 = vld [vmem:[#allocation25_spill] sm:$0xff]  ;;  %v2658_v46 = vmul.f32 %v2379_v29, %v190_v61  ;;  %v3762_v61 = vld [vmem:[#allocation52_spill] sm:$0xff] }
 0x104   :  { %v1216_v17 = vmul.f32 %v3755_v4, %v3754_v6  ;;  %v1217_v24 = vmul.f32 %v3755_v4, %v3756_v35  ;;  %v1252_v63 = vmul.f32 %v773_v23, %v2580_v50  ;;  %v1253_v38 = vmul.f32 %v773_v23, %v2591_v45  ;;  %v3757_v50 = vld [vmem:[#allocation30_spill] sm:$0xff] }
 0x105   :  { %v1254_v37 = vmul.f32 %v777_v8, %v2585_v26  ;;  %v1255_v11 = vmul.f32 %v777_v8, %v2588_v25  ;;  %v1508_v51 = vadd.f32 %v1507_v56, %v1250_v58  ;;  %v1529_v44 = vadd.f32 %v1528_v49, %v1251_v2  ;;  %1024 = vbcast.lane.b32.xlu1 %v2304_v12, 288  ;;  %v3758_v4 = vld [vmem:[#allocation26_spill] sm:$0xff]  ;;  %v3759_v58 = vld [vmem:[#allocation27_spill] sm:$0xff]  ;;  %v3761_v49 = vld [vmem:[#allocation24_spill] sm:$0xff] }
 0x106   :  { %v1465_v57 = vadd.f32 %v1464_v16, %v1216_v17  ;;  %v1486_v21 = vadd.f32 %v1485_v31, %v1217_v24  ;;  %1087 = vbcast.lane.b32.xlu0 %v3744_v36, 280  ;;  %v2661_v59 = vmul.f32 %v3757_v50, %v191_v60  ;;  %v2664_v25 = vmul.f32 %v3758_v4, %v188_v28  ;;  %v192_v16 = vld [vmem:[#allocation2 + $0x220] sm:$0xff]  ;;  %v193_v31 = vld [vmem:[#allocation2 + $0x228] sm:$0xff]  ;;  %v194_v24 = vld [vmem:[#allocation2 + $0x230] sm:$0xff] }
 0x107   :  { %v1509_v45 = vadd.f32 %v1508_v51, %v1252_v63  ;;  %v1530_v23 = vadd.f32 %v1529_v44, %v1253_v38  ;;  %v785_v6 = vpop.permute.xlu1 %784  ;;  %v781_v26 = vpop.permute.xlu0 %780  ;;  %v2667_v2 = vmul.f32 %v3759_v58, %v189_v0  ;;  %v3760_v56 = vld [vmem:[#allocation51_spill] sm:$0xff]  ;;  %v1219_v17 = vmul.f32 %v3761_v49, %v3762_v61  ;;  %v195_v63 = vld [vmem:[#allocation2 + $0x238] sm:$0xff]  ;;  %v3763_v61 = vld [vmem:[#allocation28_spill] sm:$0xff] }
 0x108   :  { %v1218_v8 = vmul.f32 %v3761_v49, %v3760_v56  ;;  %v1256_v60 = vmul.f32 %v781_v26, %v2598_v55  ;;  %v1257_v35 = vmul.f32 %v781_v26, %v2601_v62  ;;  %v1258_v38 = vmul.f32 %v785_v6, %v2604_v52 }
 0x109   :  { %v1259_v28 = vmul.f32 %v785_v6, %v2607_v53  ;;  %v1510_v0 = vadd.f32 %v1509_v45, %v1254_v37  ;;  %v1531_v51 = vadd.f32 %v1530_v23, %v1255_v11  ;;  %1091 = vbcast.lane.b32.xlu1 %v3744_v36, 288  ;;  %v1487_v58 = vadd.f32 %v1486_v21, %v1219_v17  ;;  %v196_v11 = vld [vmem:[#allocation2 + $0x240] sm:$0xff]  ;;  %v3764_v21 = vld [vmem:[#allocation57_spill] sm:$0xff]  ;;  %v3765_v45 = vld [vmem:[#allocation34_spill] sm:$0xff] }
 0x10a   :  { %v1466_v44 = vadd.f32 %v1465_v57, %v1218_v8  ;;  %1154 = vbcast.lane.b32.xlu0 %v3748_v54, 280  ;;  %v2680_v56 = vmul.f32 %v2365_v18, %v192_v16  ;;  %v2683_v55 = vmul.f32 %v2367_v19, %v193_v31  ;;  %v2686_v53 = vmul.f32 %v3763_v61, %v194_v24  ;;  %v197_v57 = vld [vmem:[#allocation2 + $0x248] sm:$0xff]  ;;  %v3766_v6 = vld [vmem:[#allocation58_spill] sm:$0xff]  ;;  %v198_v17 = vld [vmem:[#allocation2 + $0x250] sm:$0xff] }
 0x10b   :  { %v1511_v62 = vadd.f32 %v1510_v0, %v1256_v60  ;;  %v1532_v26 = vadd.f32 %v1531_v51, %v1257_v35  ;;  %v793_v49 = vpop.permute.xlu1 %792  ;;  %v789_v52 = vpop.permute.xlu0 %788  ;;  %v2689_v37 = vmul.f32 %v2377_v27, %v195_v63  ;;  %v1220_v23 = vmul.f32 %v3765_v45, %v3764_v21  ;;  %v199_v60 = vld [vmem:[#allocation2 + $0x258] sm:$0xff] }
 0x10c   :  { %v1221_v16 = vmul.f32 %v3765_v45, %v3766_v6  ;;  %v1260_v31 = vmul.f32 %v789_v52, %v2616_v5  ;;  %v1261_v8 = vmul.f32 %v789_v52, %v2619_v32  ;;  %v1262_v35 = vmul.f32 %v793_v49, %v2622_v47  ;;  %v3767_v6 = vld [vmem:[#allocation31_spill] sm:$0xff] }
 0x10d   :  { %v1263_v24 = vmul.f32 %v793_v49, %v2625_v22  ;;  %v1512_v63 = vadd.f32 %v1511_v62, %v1258_v38  ;;  %v1533_v0 = vadd.f32 %v1532_v26, %v1259_v28  ;;  %1158 = vbcast.lane.b32.xlu1 %v3748_v54, 288  ;;  %v1467_v51 = vadd.f32 %v1466_v44, %v1220_v23  ;;  %v3768_v38 = vld [vmem:[#allocation32_spill] sm:$0xff]  ;;  %v200_v44 = vld [vmem:[#allocation2 + $0x260] sm:$0xff]  ;;  %v3770_v26 = vld [vmem:[#allocation33_spill] sm:$0xff] }
 0x10e   :  { %v1488_v27 = vadd.f32 %v1487_v58, %v1221_v16  ;;  %1028 = vbcast.lane.b32.xlu0 %v2304_v12, 296  ;;  %v2702_v21 = vmul.f32 %v2387_v39, %v196_v11  ;;  %v2705_v5 = vmul.f32 %v2393_v43, %v197_v57  ;;  %v2708_v22 = vmul.f32 %v3767_v6, %v198_v17  ;;  %v201_v58 = vld [vmem:[#allocation2 + $0x268] sm:$0xff]  ;;  %v3769_v62 = vld [vmem:[#allocation55_spill] sm:$0xff]  ;;  %v3772_v6 = vld [vmem:[#allocation38_spill] sm:$0xff] }
 0x10f   :  { %v1513_v32 = vadd.f32 %v1512_v63, %v1260_v31  ;;  %v1534_v52 = vadd.f32 %v1533_v0, %v1261_v8  ;;  %v801_v45 = vpop.permute.xlu1 %800  ;;  %v797_v47 = vpop.permute.xlu0 %796  ;;  %v2711_v28 = vmul.f32 %v3768_v38, %v199_v60  ;;  %v1222_v49 = vmul.f32 %v3770_v26, %v3769_v62  ;;  %v3771_v11 = vld [vmem:[#allocation56_spill] sm:$0xff]  ;;  %v202_v62 = vld [vmem:[#allocation2 + $0x270] sm:$0xff]  ;;  %v203_v38 = vld [vmem:[#allocation2 + $0x278] sm:$0xff] }
 0x110   :  { %v1223_v23 = vmul.f32 %v3770_v26, %v3771_v11  ;;  %v1264_v57 = vmul.f32 %v797_v47, %v2636_v40  ;;  %v1265_v16 = vmul.f32 %v797_v47, %v2639_v10  ;;  %v1266_v31 = vmul.f32 %v801_v45, %v2642_v7  ;;  %v3773_v40 = vld [vmem:[#allocation39_spill] sm:$0xff] }
 0x111   :  { %v1267_v8 = vmul.f32 %v801_v45, %v2645_v48  ;;  %v1514_v17 = vadd.f32 %v1513_v32, %v1262_v35  ;;  %v1535_v63 = vadd.f32 %v1534_v52, %v1263_v24  ;;  %1032 = vbcast.lane.b32.xlu1 %v2304_v12, 304  ;;  %v1468_v60 = vadd.f32 %v1467_v51, %v1222_v49  ;;  %v3774_v10 = vld [vmem:[#allocation63_spill] sm:$0xff]  ;;  %v3776_v48 = vld [vmem:[#allocation64_spill] sm:$0xff] }
 0x112   :  { %v1489_v0 = vadd.f32 %v1488_v27, %v1223_v23  ;;  %1095 = vbcast.lane.b32.xlu0 %v3744_v36, 296  ;;  %v2724_v26 = vmul.f32 %v3772_v6, %v200_v44  ;;  %v2727_v11 = vmul.f32 %v3773_v40, %v201_v58  ;;  %v3775_v7 = vld [vmem:[#allocation47_spill] sm:$0xff]  ;;  %v205_v23 = vld [vmem:[#allocation2 + $0x288] sm:$0xff] }
 0x113   :  { %v1224_v47 = vmul.f32 %v3775_v7, %v3774_v10  ;;  %v1225_v35 = vmul.f32 %v3775_v7, %v3776_v48  ;;  %v1515_v24 = vadd.f32 %v1514_v17, %v1264_v57  ;;  %v1536_v32 = vadd.f32 %v1535_v63, %v1265_v16  ;;  %v812_v51 = vpop.permute.xlu1 %811  ;;  %v808_v27 = vpop.permute.xlu0 %807  ;;  %v204_v58 = vld [vmem:[#allocation2 + $0x280] sm:$0xff]  ;;  %v3777_v57 = vld [vmem:[#allocation36_spill] sm:$0xff]  ;;  %v3778_v17 = vld [vmem:[#allocation37_spill] sm:$0xff] }
 0x114   :  { %v1270_v52 = vmul.f32 %v812_v51, %v2658_v46  ;;  %v1271_v45 = vmul.f32 %v812_v51, %v2661_v59  ;;  %v1268_v44 = vmul.f32 %v808_v27, %v2664_v25  ;;  %v1269_v49 = vmul.f32 %v808_v27, %v2667_v2  ;;  %v206_v46 = vld [vmem:[#allocation2 + $0x290] sm:$0xff]  ;;  %v207_v2 = vld [vmem:[#allocation2 + $0x298] sm:$0xff]  ;;  %v3781_v27 = vld [vmem:[#allocation60_spill] sm:$0xff] }
 0x115   :  { %v2737_v40 = vadd.f32 %v1515_v24, %v1266_v31  ;;  %v2739_v10 = vadd.f32 %v1536_v32, %v1267_v8  ;;  %1099 = vbcast.lane.b32.xlu1 %v3744_v36, 304  ;;  %v2743_v16 = vmul.f32 %v3777_v57, %v202_v62  ;;  %v2746_v63 = vmul.f32 %v3778_v17, %v203_v38  ;;  %v208_v31 = vld [vmem:[#allocation2 + $0x2a0] sm:$0xff]  ;;  %v209_v24 = vld [vmem:[#allocation2 + $0x2a8] sm:$0xff]  ;;  %v3780_v32 = vld [vmem:[#allocation46_spill] sm:$0xff] }
 0x116   :  { %v1469_v59 = vadd.f32 %v1468_v60, %v1224_v47  ;;  %v1490_v7 = vadd.f32 %v1489_v0, %v1225_v35  ;;  %v1544_v25 = vadd.f32 %v1270_v52, %v1268_v44  ;;  %v1565_v48 = vadd.f32 %v1271_v45, %v1269_v49  ;;  %1162 = vbcast.lane.b32.xlu0 %v3748_v54, 296  ;;  %v3779_v8 = vld [vmem:[#allocation59_spill] sm:$0xff]  ;;  %v3782_v38 = vld [vmem:[#allocation42_spill] sm:$0xff]  ;;  %v210_v47 = vld [vmem:[#allocation2 + $0x2b0] sm:$0xff] }
 0x117   :  { %v1226_v51 = vmul.f32 %v3780_v32, %v3779_v8  ;;  %v1227_v62 = vmul.f32 %v3780_v32, %v3781_v27  ;;  %v820_v57 = vpop.permute.xlu1 %819  ;;  %v816_v6 = vpop.permute.xlu0 %815  ;;  %v2754_v17 = vmul.f32 %v3782_v38, %v204_v58  ;;  %v3783_v60 = vld [vmem:[#allocation43_spill] sm:$0xff]  ;;  %v211_v49 = vld [vmem:[#allocation2 + $0x2b8] sm:$0xff]  ;;  %v213_v32 = vld [vmem:[#allocation2 + $0x2c8] sm:$0xff] }
 0x118   :  { %v2757_v0 = vmul.f32 %v3783_v60, %v205_v23  ;;  %v1274_v35 = vmul.f32 %v820_v57, %v2686_v53  ;;  %v1275_v52 = vmul.f32 %v820_v57, %v2689_v37  ;;  %v1272_v45 = vmul.f32 %v816_v6, %v2680_v56  ;;  %v212_v8 = vld [vmem:[#allocation2 + $0x2c0] sm:$0xff]  ;;  %v3784_v27 = vld [vmem:[#allocation40_spill] sm:$0xff]  ;;  %v3785_v38 = vld [vmem:[#allocation41_spill] sm:$0xff] }
 0x119   :  { %v1273_v44 = vmul.f32 %v816_v6, %v2683_v55  ;;  %1166 = vbcast.lane.b32.xlu1 %v3748_v54, 304  ;;  %v2765_v58 = vmul.f32 %v3784_v27, %v206_v46  ;;  %v2768_v23 = vmul.f32 %v3785_v38, %v207_v2  ;;  %v2771_v60 = vmul.f32 %v2438_v41, %v208_v31  ;;  %v214_v38 = vld [vmem:[#allocation2 + $0x2d0] sm:$0xff]  ;;  %v215_v41 = vld [vmem:[#allocation2 + $0x2d8] sm:$0xff] }
 0x11a   :  { %v2774_v53 = vmul.f32 %v2440_v14, %v209_v24  ;;  %v1470_v56 = vadd.f32 %v1469_v59, %v1226_v51  ;;  %v1491_v37 = vadd.f32 %v1490_v7, %v1227_v62  ;;  %v1545_v55 = vadd.f32 %v1544_v25, %v1272_v45  ;;  %1036 = vbcast.lane.b32.xlu0 %v2304_v12, 312  ;;  %v3786_v59 = vld [vmem:[#allocation67_spill] sm:$0xff]  ;;  %v3787_v7 = vld [vmem:[#allocation62_spill] sm:$0xff] }
 0x11b   :  { %v1566_v6 = vadd.f32 %v1565_v48, %v1273_v44  ;;  %v828_v57 = vpop.permute.xlu1 %827  ;;  %v824_v43 = vpop.permute.xlu0 %823  ;;  %v2778_v46 = vmul.f32 %v2422_v1, %v210_v47  ;;  %v2781_v2 = vmul.f32 %v2424_v3, %v211_v49  ;;  %v2784_v31 = vmul.f32 %v2458_v15, %v212_v8  ;;  %v3788_v48 = vld [vmem:[#allocation68_spill] sm:$0xff]  ;;  %v216_v62 = vld [vmem:[#allocation2 + $0x2e0] sm:$0xff]  ;;  %v3789_v8 = vld [vmem:[#allocation17_spill] sm:$0xff] }
 0x11c   :  { %v2787_v14 = vmul.f32 %v2471_v34, %v213_v32  ;;  %v1228_v25 = vmul.f32 %v3787_v7, %v3786_v59  ;;  %v1229_v24 = vmul.f32 %v3787_v7, %v3788_v48  ;;  %v1546_v51 = vadd.f32 %v1545_v55, %v1274_v35  ;;  %v217_v47 = vld [vmem:[#allocation2 + $0x2e8] sm:$0xff]  ;;  %v218_v55 = vld [vmem:[#allocation2 + $0x2f0] sm:$0xff]  ;;  %v223_v59 = vld [vmem:[#allocation2 + $0x318] sm:$0xff] }
 0x11d   :  { %v1567_v1 = vadd.f32 %v1566_v6, %v1275_v52  ;;  %v1278_v3 = vmul.f32 %v828_v57, %v2708_v22  ;;  %v1279_v45 = vmul.f32 %v828_v57, %v2711_v28  ;;  %v1276_v15 = vmul.f32 %v824_v43, %v2702_v21  ;;  %1103 = vbcast.lane.b32.xlu1 %v3744_v36, 312  ;;  %v219_v21 = vld [vmem:[#allocation2 + $0x2f8] sm:$0xff] }
 0x11e   :  { %v1277_v44 = vmul.f32 %v824_v43, %v2705_v5  ;;  %v1471_v34 = vadd.f32 %v1470_v56, %v1228_v25  ;;  %v1492_v49 = vadd.f32 %v1491_v37, %v1229_v24  ;;  %973 = vbcast.lane.b32.xlu0 %v3789_v8, 320  ;;  %v2800_v32 = vmul.f32 %v2444_v13, %v214_v38  ;;  %v3790_v56 = vld [vmem:[#allocation65_spill] sm:$0xff]  ;;  %v3792_v13 = vld [vmem:[#allocation66_spill] sm:$0xff] }
 0x11f   :  { %v2803_v35 = vmul.f32 %v2446_v9, %v215_v41  ;;  %v1547_v52 = vadd.f32 %v1546_v51, %v1276_v15  ;;  %v836_v27 = vpop.permute.xlu1 %835  ;;  %v832_v28 = vpop.permute.xlu0 %831  ;;  %v2806_v43 = vmul.f32 %v2505_v42, %v216_v62  ;;  %v2809_v5 = vmul.f32 %v2507_v33, %v217_v47  ;;  %v3791_v37 = vld [vmem:[#allocation61_spill] sm:$0xff]  ;;  %v3793_v15 = vld [vmem:[#allocation71_spill] sm:$0xff] }
 0x120   :  { %v1568_v22 = vadd.f32 %v1567_v1, %v1277_v44  ;;  %v1230_v6 = vmul.f32 %v3791_v37, %v3790_v56  ;;  %v1231_v57 = vmul.f32 %v3791_v37, %v3792_v13  ;;  %v1280_v9 = vmul.f32 %v832_v28, %v2724_v26  ;;  %v222_v41 = vld [vmem:[#allocation2 + $0x310] sm:$0xff]  ;;  %v3794_v44 = vld [vmem:[#allocation74_spill] sm:$0xff] }
 0x121   :  { %v1281_v38 = vmul.f32 %v832_v28, %v2727_v11  ;;  %v1282_v7 = vmul.f32 %v836_v27, %v2743_v16  ;;  %v1283_v42 = vmul.f32 %v836_v27, %v2746_v63  ;;  %v1548_v25 = vadd.f32 %v1547_v52, %v1278_v3  ;;  %1170 = vbcast.lane.b32.xlu1 %v3748_v54, 312  ;;  %v220_v3 = vld [vmem:[#allocation2 + $0x300] sm:$0xff]  ;;  %v225_v27 = vld [vmem:[#allocation2 + $0x328] sm:$0xff] }
 0x122   :  { %v1569_v48 = vadd.f32 %v1568_v22, %v1279_v45  ;;  %v1472_v33 = vadd.f32 %v1471_v34, %v1230_v6  ;;  %v1493_v24 = vadd.f32 %v1492_v49, %v1231_v57  ;;  %1040 = vbcast.lane.b32.xlu0 %v2304_v12, 320  ;;  %v2822_v51 = vmul.f32 %v2485_v30, %v218_v55  ;;  %v221_v45 = vld [vmem:[#allocation2 + $0x308] sm:$0xff]  ;;  %v3795_v30 = vld [vmem:[#allocation73_spill] sm:$0xff]  ;;  %v224_v22 = vld [vmem:[#allocation2 + $0x320] sm:$0xff] }
 0x123   :  { %v2825_v26 = vmul.f32 %v2487_v20, %v219_v21  ;;  %v1549_v11 = vadd.f32 %v1548_v25, %v1280_v9  ;;  %v844_v62 = vpop.permute.xlu1 %843  ;;  %v840_v16 = vpop.permute.xlu0 %839  ;;  %v2828_v63 = vmul.f32 %v2379_v29, %v222_v41  ;;  %v2831_v47 = vmul.f32 %v3757_v50, %v223_v59  ;;  %v226_v9 = vld [vmem:[#allocation2 + $0x330] sm:$0xff] }
 0x124   :  { %v1570_v1 = vadd.f32 %v1569_v48, %v1281_v38  ;;  %v1232_v34 = vmul.f32 %v3794_v44, %v3793_v15  ;;  %v1233_v49 = vmul.f32 %v3794_v44, %v3795_v30  ;;  %v1284_v20 = vmul.f32 %v840_v16, %v2754_v17  ;;  %v3796_v17 = vld [vmem:[#allocation27_spill] sm:$0xff]  ;;  %v3797_v59 = vld [vmem:[#allocation69_spill] sm:$0xff] }
 0x125   :  { %v1285_v52 = vmul.f32 %v840_v16, %v2757_v0  ;;  %v1286_v29 = vmul.f32 %v844_v62, %v2765_v58  ;;  %v1287_v28 = vmul.f32 %v844_v62, %v2768_v23  ;;  %v1550_v50 = vadd.f32 %v1549_v11, %v1282_v7  ;;  %1107 = vbcast.lane.b32.xlu1 %v3744_v36, 320  ;;  %v227_v23 = vld [vmem:[#allocation2 + $0x338] sm:$0xff]  ;;  %v3798_v7 = vld [vmem:[#allocation72_spill] sm:$0xff] }
 0x126   :  { %v1571_v55 = vadd.f32 %v1570_v1, %v1283_v42  ;;  %v1473_v21 = vadd.f32 %v1472_v33, %v1232_v34  ;;  %v1494_v56 = vadd.f32 %v1493_v24, %v1233_v49  ;;  %977 = vbcast.lane.b32.xlu0 %v3789_v8, 328  ;;  %v2844_v37 = vmul.f32 %v3758_v4, %v220_v3  ;;  %v3799_v4 = vld [vmem:[#allocation70_spill] sm:$0xff]  ;;  %v229_v62 = vld [vmem:[#allocation2 + $0x348] sm:$0xff]  ;;  %v230_v49 = vld [vmem:[#allocation2 + $0x350] sm:$0xff] }
 0x127   :  { %v2847_v6 = vmul.f32 %v3796_v17, %v221_v45  ;;  %v1551_v0 = vadd.f32 %v1550_v50, %v1284_v20  ;;  %v852_v57 = vpop.permute.xlu1 %851  ;;  %v848_v58 = vpop.permute.xlu0 %847  ;;  %v2850_v38 = vmul.f32 %v2365_v18, %v224_v22  ;;  %v2853_v41 = vmul.f32 %v2367_v19, %v225_v27  ;;  %v228_v19 = vld [vmem:[#allocation2 + $0x340] sm:$0xff]  ;;  %v231_v20 = vld [vmem:[#allocation2 + $0x358] sm:$0xff]  ;;  %v233_v17 = vld [vmem:[#allocation2 + $0x368] sm:$0xff] }
 0x128   :  { %v1572_v13 = vadd.f32 %v1571_v55, %v1285_v52  ;;  %v1234_v42 = vmul.f32 %v3798_v7, %v3797_v59  ;;  %v1235_v25 = vmul.f32 %v3798_v7, %v3799_v4  ;;  %v1288_v48 = vmul.f32 %v848_v58, %v2771_v60  ;;  %v3800_v60 = vld [vmem:[#allocation29_spill] sm:$0xff]  ;;  %v3801_v27 = vld [vmem:[#allocation35_spill] sm:$0xff] }
 0x129   :  { %v1289_v33 = vmul.f32 %v848_v58, %v2774_v53  ;;  %v1290_v24 = vmul.f32 %v852_v57, %v2778_v46  ;;  %v1291_v11 = vmul.f32 %v852_v57, %v2781_v2  ;;  %v1552_v1 = vadd.f32 %v1551_v0, %v1286_v29  ;;  %1174 = vbcast.lane.b32.xlu1 %v3748_v54, 320  ;;  %v234_v7 = vld [vmem:[#allocation2 + $0x370] sm:$0xff] }
 0x12a   :  { %v1573_v18 = vadd.f32 %v1572_v13, %v1287_v28  ;;  %v1474_v16 = vadd.f32 %v1473_v21, %v1234_v42  ;;  %v1495_v3 = vadd.f32 %v1494_v56, %v1235_v25  ;;  %1044 = vbcast.lane.b32.xlu0 %v2304_v12, 328  ;;  %v2866_v45 = vmul.f32 %v3763_v61, %v226_v9  ;;  %v232_v56 = vld [vmem:[#allocation2 + $0x360] sm:$0xff]  ;;  %v3803_v13 = vld [vmem:[#allocation32_spill] sm:$0xff]  ;;  %v235_v42 = vld [vmem:[#allocation2 + $0x378] sm:$0xff] }
 0x12b   :  { %v2869_v15 = vmul.f32 %v3800_v60, %v227_v23  ;;  %v1517_v53 = vrot.slane %v2737_v40, 4  ;;  %v1538_v46 = vrot.slane %v2739_v10, 4  ;;  %v1553_v2 = vadd.f32 %v1552_v1, %v1288_v48  ;;  %v860_v34 = vpop.permute.xlu1 %859  ;;  %v856_v30 = vpop.permute.xlu0 %855  ;;  %v3804_v48 = vld [vmem:[#allocation38_spill] sm:$0xff]  ;;  %v3807_v60 = vld [vmem:[#allocation37_spill] sm:$0xff] }
 0x12c   :  { %v1574_v44 = vadd.f32 %v1573_v18, %v1289_v33  ;;  %v1292_v52 = vmul.f32 %v856_v30, %v2784_v31  ;;  %v1293_v22 = vmul.f32 %v856_v30, %v2787_v14  ;;  %v2876_v61 = vmul.f32 %v2387_v39, %v228_v19  ;;  %v3802_v14 = vld [vmem:[#allocation31_spill] sm:$0xff] }
 0x12d   :  { %v2879_v29 = vmul.f32 %v3801_v27, %v229_v62  ;;  %v1294_v28 = vmul.f32 %v860_v34, %v2800_v32  ;;  %v1295_v50 = vmul.f32 %v860_v34, %v2803_v35  ;;  %v1554_v55 = vadd.f32 %v1553_v2, %v1290_v24  ;;  %1111 = vbcast.lane.b32.xlu1 %v3744_v36, 328  ;;  %v3805_v24 = vld [vmem:[#allocation39_spill] sm:$0xff]  ;;  %v237_v2 = vld [vmem:[#allocation2 + $0x388] sm:$0xff] }
 0x12e   :  { %v1575_v21 = vadd.f32 %v1574_v44, %v1291_v11  ;;  %v1475_v0 = vrot.slane %v1474_v16, 4  ;;  %v1496_v31 = vrot.slane %v1495_v3, 4  ;;  %981 = vbcast.lane.b32.xlu0 %v3789_v8, 336  ;;  %v2886_v39 = vmul.f32 %v3802_v14, %v230_v49 }
 0x12f   :  { %v2889_v57 = vmul.f32 %v3803_v13, %v231_v20  ;;  %v1518_v32 = vadd.f32 %v1517_v53, %v2737_v40  ;;  %v1539_v35 = vadd.f32 %v1538_v46, %v2739_v10  ;;  %v1555_v58 = vadd.f32 %v1554_v55, %v1292_v52  ;;  %v868_v23 = vpop.permute.xlu1 %867  ;;  %v864_v59 = vpop.permute.xlu0 %863  ;;  %v236_v46 = vld [vmem:[#allocation2 + $0x380] sm:$0xff] }
 0x130   :  { %v1576_v9 = vadd.f32 %v1575_v21, %v1293_v22  ;;  %v1296_v4 = vmul.f32 %v864_v59, %v2806_v43  ;;  %v1297_v25 = vmul.f32 %v864_v59, %v2809_v5  ;;  %v2896_v33 = vmul.f32 %v3804_v48, %v232_v56  ;;  %v3806_v43 = vld [vmem:[#allocation36_spill] sm:$0xff]  ;;  %v3809_v55 = vld [vmem:[#allocation43_spill] sm:$0xff]  ;;  %v2928_v48 = vld [vmem:[#allocation7 + $0x90] sm:$0xff] }
 0x131   :  { %v2899_v11 = vmul.f32 %v3805_v24, %v233_v17  ;;  %v1298_v40 = vmul.f32 %v868_v23, %v2822_v51  ;;  %v1299_v10 = vmul.f32 %v868_v23, %v2825_v26  ;;  %v1556_v1 = vadd.f32 %v1555_v58, %v1294_v28  ;;  %1178 = vbcast.lane.b32.xlu1 %v3748_v54, 328  ;;  %v3808_v28 = vld [vmem:[#allocation42_spill] sm:$0xff] }
 0x132   :  { %v1577_v18 = vadd.f32 %v1576_v9, %v1295_v50  ;;  %v1476_v19 = vadd.f32 %v1475_v0, %v1474_v16  ;;  %v1497_v62 = vadd.f32 %v1496_v31, %v1495_v3  ;;  %1048 = vbcast.lane.b32.xlu0 %v2304_v12, 336  ;;  %v2906_v5 = vmul.f32 %v3806_v43, %v234_v7 }
 0x133   :  { %v2909_v53 = vmul.f32 %v3807_v60, %v235_v42  ;;  %v1519_v44 = vrot.slane %v1518_v32, 2  ;;  %v1540_v51 = vrot.slane %v1539_v35, 2  ;;  %v1557_v34 = vadd.f32 %v1556_v1, %v1296_v4  ;;  %v879_v30 = vpop.permute.xlu1 %878  ;;  %v875_v49 = vpop.permute.xlu0 %874 }
 0x134   :  { %v1578_v26 = vadd.f32 %v1577_v18, %v1297_v25  ;;  %v1302_v20 = vmul.f32 %v879_v30, %v2828_v63  ;;  %v1303_v16 = vmul.f32 %v879_v30, %v2831_v47  ;;  %v1300_v3 = vmul.f32 %v875_v49, %v2844_v37  ;;  %v238_v47 = vld [vmem:[#allocation2 + $0x390] sm:$0xff]  ;;  %v239_v37 = vld [vmem:[#allocation2 + $0x398] sm:$0xff] }
 0x135   :  { %v1301_v52 = vmul.f32 %v875_v49, %v2847_v6  ;;  %v1558_v22 = vadd.f32 %v1557_v34, %v1298_v40  ;;  %1115 = vbcast.lane.b32.xlu1 %v3744_v36, 336  ;;  %v2917_v50 = vmul.f32 %v3808_v28, %v236_v46  ;;  %v2920_v21 = vmul.f32 %v3809_v55, %v237_v2  ;;  %v240_v46 = vld [vmem:[#allocation2 + $0x3a0] sm:$0xff]  ;;  %v241_v2 = vld [vmem:[#allocation2 + $0x3a8] sm:$0xff] }
 0x136   :  { %v1579_v27 = vadd.f32 %v1578_v26, %v1299_v10  ;;  %v1477_v56 = vrot.slane %v1476_v19, 2  ;;  %v1498_v17 = vrot.slane %v1497_v62, 2  ;;  %v1586_v0 = vadd.f32 %v1302_v20, %v1300_v3  ;;  %985 = vbcast.lane.b32.xlu0 %v3789_v8, 344  ;;  %v2945_v3 = vld [vmem:[#allocation7 + $0xa0] sm:$0xff] }
 0x137   :  { %v1607_v63 = vadd.f32 %v1303_v16, %v1301_v52  ;;  %v1520_v31 = vadd.f32 %v1519_v44, %v1518_v32  ;;  %v1541_v6 = vadd.f32 %v1540_v51, %v1539_v35  ;;  %v1559_v14 = vrot.slane %v1558_v22, 4  ;;  %v887_v58 = vpop.permute.xlu1 %886  ;;  %v883_v9 = vpop.permute.xlu0 %882  ;;  %v2933_v35 = vld [vmem:[#allocation7 + $0x98] sm:$0xff]  ;;  %v2948_v52 = vld [vmem:[#allocation7 + $0xa8] sm:$0xff] }
 0x138   :  { %v1580_v13 = vrot.slane %v1579_v27, 4  ;;  %v1306_v23 = vmul.f32 %v887_v58, %v2866_v45  ;;  %v1307_v59 = vmul.f32 %v887_v58, %v2869_v15  ;;  %v1304_v7 = vmul.f32 %v883_v9, %v2850_v38 }
 0x139   :  { %v1305_v42 = vmul.f32 %v883_v9, %v2853_v41  ;;  %v1560_v4 = vadd.f32 %v1559_v14, %v1558_v22  ;;  %1182 = vbcast.lane.b32.xlu1 %v3748_v54, 336  ;;  %v2931_v32 = vmul.f32 %v2928_v48, %v238_v47  ;;  %v2936_v24 = vmul.f32 %v2933_v35, %v239_v37  ;;  %v242_v47 = vld [vmem:[#allocation2 + $0x3b0] sm:$0xff]  ;;  %v243_v37 = vld [vmem:[#allocation2 + $0x3b8] sm:$0xff] }
 0x13a   :  { %v1581_v25 = vadd.f32 %v1580_v13, %v1579_v27  ;;  %v1478_v45 = vadd.f32 %v1477_v56, %v1476_v19  ;;  %v1499_v15 = vadd.f32 %v1498_v17, %v1497_v62  ;;  %v1587_v38 = vadd.f32 %v1586_v0, %v1304_v7  ;;  %1052 = vbcast.lane.b32.xlu0 %v2304_v12, 344 }
 0x13b   :  { %v1608_v40 = vadd.f32 %v1607_v63, %v1305_v42  ;;  %v1521_v41 = vrot.slane %v1520_v31, 1  ;;  %v1542_v10 = vrot.slane %v1541_v6, 1  ;;  %v1561_v1 = vrot.slane %v1560_v4, 2  ;;  %v895_v43 = vpop.permute.xlu1 %894  ;;  %v891_v60 = vpop.permute.xlu0 %890 }
 0x13c   :  { %v1582_v18 = vrot.slane %v1581_v25, 2  ;;  %v1310_v44 = vmul.f32 %v895_v43, %v2886_v39  ;;  %v1311_v51 = vmul.f32 %v895_v43, %v2889_v57  ;;  %v1588_v34 = vadd.f32 %v1587_v38, %v1306_v23 }
 0x13d   :  { %v1609_v19 = vadd.f32 %v1608_v40, %v1307_v59  ;;  %v1562_v62 = vadd.f32 %v1561_v1, %v1560_v4  ;;  %v1308_v30 = vmul.f32 %v891_v60, %v2876_v61  ;;  %v1309_v49 = vmul.f32 %v891_v60, %v2879_v29  ;;  %1119 = vbcast.lane.b32.xlu1 %v3744_v36, 344  ;;  %v2957_v4 = vld [vmem:[#allocation7 + $0xb0] sm:$0xff]  ;;  %v245_v40 = vld [vmem:[#allocation2 + $0x3c8] sm:$0xff] }
 0x13e   :  { %v1583_v26 = vadd.f32 %v1582_v18, %v1581_v25  ;;  %v1479_v20 = vrot.slane %v1478_v45, 1  ;;  %v1500_v16 = vrot.slane %v1499_v15, 1  ;;  %989 = vbcast.lane.b32.xlu0 %v3789_v8, 352  ;;  %v528_v39 = vmul.f32 %v2945_v3, %v240_v46  ;;  %v2960_v25 = vld [vmem:[#allocation7 + $0xb8] sm:$0xff]  ;;  %v246_v46 = vld [vmem:[#allocation2 + $0x3d0] sm:$0xff] }
 0x13f   :  { %v529_v57 = vmul.f32 %v2948_v52, %v241_v2  ;;  %v1563_v22 = vrot.slane %v1562_v62, 1  ;;  %v1589_v28 = vadd.f32 %v1588_v34, %v1308_v30  ;;  %v1610_v61 = vadd.f32 %v1609_v19, %v1309_v49  ;;  %v903_v55 = vpop.permute.xlu1 %902  ;;  %v899_v29 = vpop.permute.xlu0 %898  ;;  %v247_v2 = vld [vmem:[#allocation2 + $0x3d8] sm:$0xff]  ;;  %v2977_v19 = vld [vmem:[#allocation7 + $0xc0] sm:$0xff] }
 0x140   :  { %v1584_v27 = vrot.slane %v1583_v26, 1  ;;  %v1522_v56 = vadd.f32 %v1521_v41, %v1520_v31  ;;  %v1543_v17 = vadd.f32 %v1542_v10, %v1541_v6  ;;  %v1312_v0 = vmul.f32 %v899_v29, %v2896_v33 }
 0x141   :  { %v1313_v63 = vmul.f32 %v899_v29, %v2899_v11  ;;  %v1314_v14 = vmul.f32 %v903_v55, %v2906_v5  ;;  %v1315_v13 = vmul.f32 %v903_v55, %v2909_v53  ;;  %v1590_v58 = vadd.f32 %v1589_v28, %v1310_v44  ;;  %1186 = vbcast.lane.b32.xlu1 %v3748_v54, 344  ;;  %v248_v28 = vld [vmem:[#allocation2 + $0x3e0] sm:$0xff] }
 0x142   :  { %v1611_v9 = vadd.f32 %v1610_v61, %v1311_v51  ;;  %v1480_v23 = vadd.f32 %v1479_v20, %v1478_v45  ;;  %v1501_v59 = vadd.f32 %v1500_v16, %v1499_v15  ;;  %v1564_v7 = vadd.f32 %v1563_v22, %v1562_v62  ;;  %1056 = vbcast.lane.b32.xlu0 %v2304_v12, 352  ;;  %v244_v15 = vld [vmem:[#allocation2 + $0x3c0] sm:$0xff]  ;;  %v2980_v62 = vld [vmem:[#allocation7 + $0xc8] sm:$0xff]  ;;  %v2983_v20 = vld [vmem:[#allocation7 + $0xd0] sm:$0xff] }
 0x143   :  { %v1585_v42 = vadd.f32 %v1584_v27, %v1583_v26  ;;  %v1591_v31 = vadd.f32 %v1590_v58, %v1312_v0  ;;  %v911_v6 = vpop.permute.xlu1 %910  ;;  %v907_v11 = vpop.permute.xlu0 %906  ;;  %v530_v5 = vmul.f32 %v2957_v4, %v242_v47  ;;  %v531_v53 = vmul.f32 %v2960_v25, %v243_v37  ;;  %3810 = vst [vmem:[#allocation18_spill] sm:$0xff] %v2983_v20  ;;  %v2986_v22 = vld [vmem:[#allocation7 + $0xd8] sm:$0xff]  ;;  %v249_v61 = vld [vmem:[#allocation2 + $0x3e8] sm:$0xff]  ;;  %v250_v0 = vld [vmem:[#allocation2 + $0x3f0] sm:$0xff] }
 0x144   :  { %v1612_v33 = vadd.f32 %v1611_v9, %v1313_v63  ;;  %v1316_v38 = vmul.f32 %v907_v11, %v2917_v50  ;;  %v1317_v45 = vmul.f32 %v907_v11, %v2920_v21  ;;  %v1813_v41 = vsel %vm1812_vm0, %v1522_v56, %v1480_v23  ;;  %3811 = vst [vmem:[#allocation44_spill] sm:$0xff] %v2986_v22  ;;  %v251_v63 = vld [vmem:[#allocation2 + $0x3f8] sm:$0xff]  ;;  %v2994_v58 = vld [vmem:[#allocation7 + $0xe8] sm:$0xff] }
 0x145   :  { %v1826_v10 = vsel %vm1812_vm0, %v1543_v17, %v1501_v59  ;;  %v1318_v1 = vmul.f32 %v911_v6, %v2931_v32  ;;  %v1319_v18 = vmul.f32 %v911_v6, %v2936_v24  ;;  %v1592_v43 = vadd.f32 %v1591_v31, %v1314_v14  ;;  %1123 = vbcast.lane.b32.xlu1 %v3744_v36, 352  ;;  %v2991_v14 = vld [vmem:[#allocation7 + $0xe0] sm:$0xff]  ;;  %v3000_v31 = vld [vmem:[#allocation7 + $0xf8] sm:$0xff]  ;;  %v254_v6 = vld [vmem:[#allocation2 + $0x410] sm:$0xff] }
 0x146   :  { %v1613_v60 = vadd.f32 %v1612_v33, %v1315_v13  ;;  %993 = vbcast.lane.b32.xlu0 %v3789_v8, 360  ;;  %v2972_v50 = vsel %vm1814_vm1, %v1564_v7, %v1813_v41  ;;  %v2975_v21 = vsel %vm1814_vm1, %v1585_v42, %v1826_v10  ;;  %v532_v24 = vmul.f32 %v2977_v19, %v244_v15  ;;  %v2997_v7 = vld [vmem:[#allocation7 + $0xf0] sm:$0xff]  ;;  %v252_v15 = vld [vmem:[#allocation2 + $0x400] sm:$0xff] }
 0x147   :  { %v1593_v44 = vadd.f32 %v1592_v43, %v1316_v38  ;;  %v919_v34 = vpop.permute.xlu1 %918  ;;  %v915_v32 = vpop.permute.xlu0 %914  ;;  %v533_v26 = vmul.f32 %v2980_v62, %v245_v40  ;;  %v534_v16 = vmul.f32 %v2983_v20, %v246_v46  ;;  %v535_v27 = vmul.f32 %v2986_v22, %v247_v2  ;;  %3812 = vst [vmem:[#allocation21_spill] sm:$0xff] %v2991_v14  ;;  %v255_v11 = vld [vmem:[#allocation2 + $0x418] sm:$0xff]  ;;  %v253_v40 = vld [vmem:[#allocation2 + $0x408] sm:$0xff]  ;;  %v3008_v46 = vld [vmem:[#allocation7 + $0x18] sm:$0xff] }
 0x148   :  { %v1614_v51 = vadd.f32 %v1613_v60, %v1317_v45  ;;  %v1320_v30 = vmul.f32 %v915_v32, %v528_v39  ;;  %v1321_v49 = vmul.f32 %v915_v32, %v529_v57  ;;  %v1322_v55 = vmul.f32 %v919_v34, %v530_v5  ;;  %3813 = vst [vmem:[#allocation45_spill] sm:$0xff] %v2994_v58  ;;  %v3005_v43 = vld [vmem:[#allocation7 + $0x10] sm:$0xff] }
 0x149   :  { %v1323_v29 = vmul.f32 %v919_v34, %v531_v53  ;;  %v1594_v56 = vadd.f32 %v1593_v44, %v1318_v1  ;;  %1190 = vbcast.lane.b32.xlu1 %v3748_v54, 352  ;;  %v536_v13 = vmul.f32 %v2991_v14, %v248_v28  ;;  %v537_v9 = vmul.f32 %v2994_v58, %v249_v61  ;;  %v256_v44 = vld [vmem:[#allocation2 + $0x420] sm:$0xff]  ;;  %v318_v14 = vld [vmem:[#allocation2 + $0x610] sm:$0xff] }
 0x14a   :  { %v1615_v17 = vadd.f32 %v1614_v51, %v1319_v18  ;;  %1060 = vbcast.lane.b32.xlu0 %v2304_v12, 360  ;;  %3814 = vst [vmem:[#allocation19_spill] sm:$0xff] %v2997_v7  ;;  %v538_v42 = vmul.f32 %v2997_v7, %v250_v0  ;;  %3815 = vst [vmem:[#allocation23_spill] sm:$0xff] %v3000_v31  ;;  %v539_v33 = vmul.f32 %v3000_v31, %v251_v63  ;;  %v257_v51 = vld [vmem:[#allocation2 + $0x428] sm:$0xff]  ;;  %v3022_v0 = vld [vmem:[#allocation7 + $0x28] sm:$0xff] }
 0x14b   :  { %v1595_v39 = vadd.f32 %v1594_v56, %v1320_v30  ;;  %v927_v47 = vpop.permute.xlu1 %926  ;;  %v923_v37 = vpop.permute.xlu0 %922  ;;  %v542_v60 = vmul.f32 %v3005_v43, %v254_v6  ;;  %v543_v2 = vmul.f32 %v3008_v46, %v255_v11  ;;  %v3014_v30 = vld [vmem:[#allocation7 + $0x8] sm:$0xff]  ;;  %v3019_v56 = vld [vmem:[#allocation7 + $0x20] sm:$0xff]  ;;  %v545_v63 = vmul.f32 %v3022_v0, %v257_v51 }
 0x14c   :  { %v1616_v57 = vadd.f32 %v1615_v17, %v1321_v49  ;;  %v1324_v23 = vmul.f32 %v923_v37, %v532_v24  ;;  %v1325_v59 = vmul.f32 %v923_v37, %v533_v26  ;;  %v1326_v5 = vmul.f32 %v927_v47, %v534_v16  ;;  %v3011_v24 = vld [vmem:[#allocation7] sm:$0xff]  ;;  %v258_v16 = vld [vmem:[#allocation2 + $0x430] sm:$0xff] }
 0x14d   :  { %v1327_v53 = vmul.f32 %v927_v47, %v535_v27  ;;  %v1596_v38 = vadd.f32 %v1595_v39, %v1322_v55  ;;  %1127 = vbcast.lane.b32.xlu1 %v3744_v36, 360  ;;  %v540_v26 = vmul.f32 %v3011_v24, %v252_v15  ;;  %v541_v49 = vmul.f32 %v3014_v30, %v253_v40  ;;  %v259_v27 = vld [vmem:[#allocation2 + $0x438] sm:$0xff] }
 0x14e   :  { %v1617_v45 = vadd.f32 %v1616_v57, %v1323_v29  ;;  %997 = vbcast.lane.b32.xlu0 %v3789_v8, 368  ;;  %v544_v17 = vmul.f32 %v3019_v56, %v256_v44  ;;  %v264_v44 = vld [vmem:[#allocation2 + $0x460] sm:$0xff] }
 0x14f   :  { %v1597_v41 = vadd.f32 %v1596_v38, %v1324_v23  ;;  %v935_v1 = vpop.permute.xlu1 %934  ;;  %v931_v18 = vpop.permute.xlu0 %930  ;;  %v3028_v23 = vld [vmem:[#allocation7 + $0x38] sm:$0xff]  ;;  %v263_v38 = vld [vmem:[#allocation2 + $0x458] sm:$0xff] }
 0x150   :  { %v1618_v10 = vadd.f32 %v1617_v45, %v1325_v59  ;;  %v1328_v34 = vmul.f32 %v931_v18, %v536_v13  ;;  %v1329_v32 = vmul.f32 %v931_v18, %v537_v9  ;;  %v1330_v28 = vmul.f32 %v935_v1, %v538_v42  ;;  %v3025_v13 = vld [vmem:[#allocation7 + $0x30] sm:$0xff]  ;;  %v260_v42 = vld [vmem:[#allocation2 + $0x440] sm:$0xff] }
 0x151   :  { %v1331_v61 = vmul.f32 %v935_v1, %v539_v33  ;;  %v1598_v55 = vadd.f32 %v1597_v41, %v1326_v5  ;;  %1194 = vbcast.lane.b32.xlu1 %v3748_v54, 360  ;;  %v546_v9 = vmul.f32 %v3025_v13, %v258_v16  ;;  %v547_v59 = vmul.f32 %v3028_v23, %v259_v27  ;;  %v3033_v1 = vld [vmem:[#allocation7 + $0x40] sm:$0xff]  ;;  %v266_v27 = vld [vmem:[#allocation2 + $0x470] sm:$0xff] }
 0x152   :  { %v1619_v29 = vadd.f32 %v1618_v10, %v1327_v53  ;;  %1064 = vbcast.lane.b32.xlu0 %v2304_v12, 368  ;;  %v262_v53 = vld [vmem:[#allocation2 + $0x450] sm:$0xff]  ;;  %v261_v10 = vld [vmem:[#allocation2 + $0x448] sm:$0xff]  ;;  %v548_v18 = vmul.f32 %v3033_v1, %v260_v42 }
 0x153   :  { %v1599_v39 = vadd.f32 %v1598_v55, %v1328_v34  ;;  %v946_v47 = vpop.permute.xlu1 %945  ;;  %v942_v37 = vpop.permute.xlu0 %941  ;;  %v3043_v42 = vld [vmem:[#allocation7 + $0x48] sm:$0xff] }
 0x154   :  { %v1620_v57 = vadd.f32 %v1619_v29, %v1329_v32  ;;  %v1334_v33 = vmul.f32 %v946_v47, %v542_v60  ;;  %v1335_v6 = vmul.f32 %v946_v47, %v543_v2  ;;  %v1332_v11 = vmul.f32 %v942_v37, %v540_v26  ;;  %v3036_v32 = vld [vmem:[#allocation7 + $0x50] sm:$0xff] }
 0x155   :  { %v1333_v5 = vmul.f32 %v942_v37, %v541_v49  ;;  %v1600_v45 = vadd.f32 %v1599_v39, %v1330_v28  ;;  %1131 = vbcast.lane.b32.xlu1 %v3744_v36, 368  ;;  %v550_v26 = vmul.f32 %v3036_v32, %v262_v53  ;;  %v3039_v49 = vld [vmem:[#allocation7 + $0x58] sm:$0xff]  ;;  %v267_v39 = vld [vmem:[#allocation2 + $0x478] sm:$0xff] }
 0x156   :  { %v1621_v15 = vadd.f32 %v1620_v57, %v1331_v61  ;;  %v1628_v40 = vadd.f32 %v1334_v33, %v1332_v11  ;;  %1001 = vbcast.lane.b32.xlu0 %v3789_v8, 376  ;;  %v551_v16 = vmul.f32 %v3039_v49, %v263_v38  ;;  %v265_v8 = vld [vmem:[#allocation2 + $0x468] sm:$0xff]  ;;  %v286_v57 = vld [vmem:[#allocation2 + $0x510] sm:$0xff]  ;;  %v549_v33 = vmul.f32 %v3043_v42, %v261_v10 }
 0x157   :  { %v1649_v41 = vadd.f32 %v1335_v6, %v1333_v5  ;;  %v1601_v60 = vrot.slane %v1600_v45, 4  ;;  %v954_v51 = vpop.permute.xlu1 %953  ;;  %v950_v34 = vpop.permute.xlu0 %949  ;;  %v3046_v6 = vld [vmem:[#allocation7 + $0x60] sm:$0xff] }
 0x158   :  { %v1622_v2 = vrot.slane %v1621_v15, 4  ;;  %v1338_v28 = vmul.f32 %v954_v51, %v546_v9  ;;  %v1339_v61 = vmul.f32 %v954_v51, %v547_v59  ;;  %v1336_v55 = vmul.f32 %v950_v34, %v544_v17  ;;  %v3050_v17 = vld [vmem:[#allocation7 + $0x70] sm:$0xff]  ;;  %v3053_v9 = vld [vmem:[#allocation7 + $0x68] sm:$0xff] }
 0x159   :  { %v1337_v29 = vmul.f32 %v950_v34, %v545_v63  ;;  %v1602_v47 = vadd.f32 %v1601_v60, %v1600_v45  ;;  %1198 = vbcast.lane.b32.xlu1 %v3748_v54, 368  ;;  %v552_v11 = vmul.f32 %v3046_v6, %v264_v44  ;;  %v554_v63 = vmul.f32 %v3050_v17, %v266_v27  ;;  %v3056_v60 = vld [vmem:[#allocation7 + $0x78] sm:$0xff] }
 0x15a   :  { %v1623_v37 = vadd.f32 %v1622_v2, %v1621_v15  ;;  %v1629_v5 = vadd.f32 %v1628_v40, %v1336_v55  ;;  %1068 = vbcast.lane.b32.xlu0 %v2304_v12, 376  ;;  %v553_v59 = vmul.f32 %v3053_v9, %v265_v8  ;;  %v555_v44 = vmul.f32 %v3056_v60, %v267_v39  ;;  %v287_v40 = vld [vmem:[#allocation2 + $0x518] sm:$0xff]  ;;  %v284_v12 = vld [vmem:[#allocation2 + $0x500] sm:$0xff]  ;;  %v285_v2 = vld [vmem:[#allocation2 + $0x508] sm:$0xff] }
 0x15b   :  { %v1650_v53 = vadd.f32 %v1649_v41, %v1337_v29  ;;  %v1603_v38 = vrot.slane %v1602_v47, 2  ;;  %v962_v15 = vpop.permute.xlu1 %961  ;;  %v958_v10 = vpop.permute.xlu0 %957  ;;  %v574_v41 = vmul.f32 %v3005_v43, %v286_v57  ;;  %v575_v58 = vmul.f32 %v3008_v46, %v287_v40 }
 0x15c   :  { %v1624_v45 = vrot.slane %v1623_v37, 2  ;;  %v1342_v51 = vmul.f32 %v962_v15, %v550_v26  ;;  %v1343_v34 = vmul.f32 %v962_v15, %v551_v16  ;;  %v1630_v27 = vadd.f32 %v1629_v5, %v1338_v28  ;;  %v317_v5 = vld [vmem:[#allocation2 + $0x608] sm:$0xff] }
 0x15d   :  { %v1651_v55 = vadd.f32 %v1650_v53, %v1339_v61  ;;  %v1604_v29 = vadd.f32 %v1603_v38, %v1602_v47  ;;  %v1340_v8 = vmul.f32 %v958_v10, %v548_v18  ;;  %v1341_v7 = vmul.f32 %v958_v10, %v549_v33  ;;  %1202 = vbcast.lane.b32.xlu1 %v3748_v54, 376  ;;  %v319_v18 = vld [vmem:[#allocation2 + $0x618] sm:$0xff]  ;;  %v316_v33 = vld [vmem:[#allocation2 + $0x600] sm:$0xff] }
 0x15e   :  { %v1625_v31 = vadd.f32 %v1624_v45, %v1623_v37  ;;  %1135 = vbcast.lane.b32.xlu0 %v3744_v36, 376  ;;  %v572_v39 = vmul.f32 %v3011_v24, %v284_v12  ;;  %v573_v57 = vmul.f32 %v3014_v30, %v285_v2  ;;  %v606_v12 = vmul.f32 %v3005_v43, %v318_v14 }
 0x15f   :  { %v1605_v26 = vrot.slane %v1604_v29, 1  ;;  %v1631_v28 = vadd.f32 %v1630_v27, %v1340_v8  ;;  %v1652_v61 = vadd.f32 %v1651_v55, %v1341_v7  ;;  %v970_v47 = vpop.permute.xlu1 %969  ;;  %v966_v37 = vpop.permute.xlu0 %965  ;;  %v607_v2 = vmul.f32 %v3008_v46, %v319_v18 }
 0x160   :  { %v1626_v16 = vrot.slane %v1625_v31, 1  ;;  %v1346_v54 = vmul.f32 %v970_v47, %v554_v63  ;;  %v1347_v53 = vmul.f32 %v970_v47, %v555_v44  ;;  %v1344_v36 = vmul.f32 %v966_v37, %v552_v11 }
 0x161   :  { %v1345_v38 = vmul.f32 %v966_v37, %v553_v59  ;;  %v1606_v45 = vadd.f32 %v1605_v26, %v1604_v29  ;;  %v1632_v10 = vadd.f32 %v1631_v28, %v1342_v51  ;;  %v1653_v40 = vadd.f32 %v1652_v61, %v1343_v34  ;;  %v288_v51 = vld [vmem:[#allocation2 + $0x520] sm:$0xff]  ;;  %v289_v34 = vld [vmem:[#allocation2 + $0x528] sm:$0xff] }
 0x162   :  { %v1627_v15 = vadd.f32 %v1626_v16, %v1625_v31  ;;  %v604_v27 = vmul.f32 %v3011_v24, %v316_v33  ;;  %v605_v7 = vmul.f32 %v3014_v30, %v317_v5  ;;  %v577_v37 = vmul.f32 %v3022_v0, %v289_v34 }
 0x163   :  { %v1633_v55 = vadd.f32 %v1632_v10, %v1344_v36  ;;  %v1654_v8 = vadd.f32 %v1653_v40, %v1345_v38  ;;  %v1013_v22 = vpop.permute.xlu1 %1012  ;;  %v1009_v20 = vpop.permute.xlu0 %1008  ;;  %v3071_v11 = vsel %vm1816_vm2, %v1606_v45, %v2972_v50  ;;  %v576_v50 = vmul.f32 %v3019_v56, %v288_v51  ;;  %v351_v36 = vld [vmem:[#allocation2 + $0x718] sm:$0xff] }
 0x164   :  { %3816 = vst [vmem:[#allocation50_spill] sm:$0xff] %v3071_v11  ;;  %v3075_v31 = vsel %vm1816_vm2, %v1627_v15, %v2975_v21  ;;  %v1366_v63 = vmul.f32 %v1013_v22, %v574_v41  ;;  %v1367_v14 = vmul.f32 %v1013_v22, %v575_v58  ;;  %v1364_v59 = vmul.f32 %v1009_v20, %v572_v39  ;;  %v348_v58 = vld [vmem:[#allocation2 + $0x700] sm:$0xff]  ;;  %v321_v39 = vld [vmem:[#allocation2 + $0x628] sm:$0xff] }
 0x165   :  { %3817 = vst [vmem:[#allocation48_spill] sm:$0xff] %v3075_v31  ;;  %v1365_v44 = vmul.f32 %v1009_v20, %v573_v57  ;;  %v3077_v29 = vadd.f32 %v1633_v55, %v1346_v54  ;;  %v3079_v26 = vadd.f32 %v1654_v8, %v1347_v53  ;;  %v320_v20 = vld [vmem:[#allocation2 + $0x620] sm:$0xff]  ;;  %v3083_v57 = vpop.f32.mrb[0].mxu0  ;;  %v349_v54 = vld [vmem:[#allocation2 + $0x708] sm:$0xff]  ;;  %v350_v53 = vld [vmem:[#allocation2 + $0x710] sm:$0xff]  ;;  %v636_v55 = vmul.f32 %v3011_v24, %v348_v58 }
 0x166   :  { %v1670_v16 = vadd.f32 %v1366_v63, %v1364_v59  ;;  %3820 = vst [vmem:[#allocation53_spill] sm:$0xff] %v3083_v57  ;;  %v3085_v38 = vpop.f32.mrb[1].mxu0  ;;  %v637_v8 = vmul.f32 %v3014_v30, %v349_v54  ;;  %v638_v63 = vmul.f32 %v3005_v43, %v350_v53  ;;  %v290_v59 = vld [vmem:[#allocation2 + $0x530] sm:$0xff]  ;;  %v292_v58 = vld [vmem:[#allocation2 + $0x540] sm:$0xff]  ;;  %v323_v54 = vld [vmem:[#allocation2 + $0x638] sm:$0xff] }
 0x167   :  { %3818 = vst [vmem:[#allocation22_spill] sm:$0xff] %v3077_v29  ;;  %3819 = vst [vmem:[#allocation49_spill] sm:$0xff] %v3079_v26  ;;  %v1691_v28 = vadd.f32 %v1367_v14, %v1365_v44  ;;  %v1080_v61 = vpop.permute.xlu1 %1079  ;;  %v1076_v47 = vpop.permute.xlu0 %1075  ;;  %v639_v14 = vmul.f32 %v3008_v46, %v351_v36  ;;  %v291_v44 = vld [vmem:[#allocation2 + $0x538] sm:$0xff]  ;;  %v578_v24 = vmul.f32 %v3025_v13, %v290_v59  ;;  %v269_v26 = vld [vmem:[#allocation2 + $0x488] sm:$0xff] }
 0x168   :  { %v1398_v21 = vmul.f32 %v1080_v61, %v606_v12  ;;  %v1399_v18 = vmul.f32 %v1080_v61, %v607_v2  ;;  %v1396_v41 = vmul.f32 %v1076_v47, %v604_v27  ;;  %v1397_v22 = vmul.f32 %v1076_v47, %v605_v7  ;;  %3821 = vst [vmem:[#allocation25_spill] sm:$0xff] %v3085_v38  ;;  %v352_v27 = vld [vmem:[#allocation2 + $0x720] sm:$0xff]  ;;  %v353_v7 = vld [vmem:[#allocation2 + $0x728] sm:$0xff] }
 0x169   :  { %v608_v12 = vmul.f32 %v3019_v56, %v320_v20  ;;  %v609_v2 = vmul.f32 %v3022_v0, %v321_v39  ;;  %v640_v47 = vmul.f32 %v3019_v56, %v352_v27  ;;  %v579_v30 = vmul.f32 %v3028_v23, %v291_v44  ;;  %v293_v20 = vld [vmem:[#allocation2 + $0x548] sm:$0xff]  ;;  %v322_v39 = vld [vmem:[#allocation2 + $0x630] sm:$0xff] }
 0x16a   :  { %v1712_v33 = vadd.f32 %v1398_v21, %v1396_v41  ;;  %v1733_v5 = vadd.f32 %v1399_v18, %v1397_v22  ;;  %v610_v27 = vmul.f32 %v3025_v13, %v322_v39  ;;  %v356_v39 = vld [vmem:[#allocation2 + $0x740] sm:$0xff] }
 0x16b   :  { %v1143_v45 = vpop.permute.xlu1 %1142  ;;  %v1017_v15 = vpop.permute.xlu0 %1016  ;;  %v3148_v11 = vmul.f32 %v3033_v1, %v356_v39  ;;  %v333_v39 = vld [vmem:[#allocation2 + $0x688] sm:$0xff] }
 0x16c   :  { %v1368_v10 = vmul.f32 %v1017_v15, %v576_v50  ;;  %v1369_v40 = vmul.f32 %v1017_v15, %v577_v37  ;;  %v641_v50 = vmul.f32 %v3022_v0, %v353_v7  ;;  %v1428_v41 = vmul.f32 %v1143_v45, %v636_v55 }
 0x16d   :  { %v1429_v43 = vmul.f32 %v1143_v45, %v637_v8  ;;  %v611_v7 = vmul.f32 %v3028_v23, %v323_v54  ;;  %v357_v54 = vld [vmem:[#allocation2 + $0x748] sm:$0xff] }
 0x16e   :  { %v1671_v51 = vadd.f32 %v1670_v16, %v1368_v10  ;;  %v1692_v34 = vadd.f32 %v1691_v28, %v1369_v40  ;;  %v580_v40 = vmul.f32 %v3033_v1, %v292_v58  ;;  %v324_v58 = vld [vmem:[#allocation2 + $0x640] sm:$0xff] }
 0x16f   :  { %v1084_v61 = vpop.permute.xlu1 %1083 }
 0x170   :  { %v1400_v37 = vmul.f32 %v1084_v61, %v608_v12  ;;  %v1401_v21 = vmul.f32 %v1084_v61, %v609_v2  ;;  %v1147_v18 = vpop.permute.xlu0 %1146  ;;  %v581_v12 = vmul.f32 %v3043_v42, %v293_v20  ;;  %v325_v20 = vld [vmem:[#allocation2 + $0x648] sm:$0xff] }
 0x171   :  { %v1430_v22 = vmul.f32 %v1147_v18, %v638_v63  ;;  %v1431_v46 = vmul.f32 %v1147_v18, %v639_v14 }
 0x172   :  { %v1713_v16 = vadd.f32 %v1712_v33, %v1400_v37  ;;  %v1734_v28 = vadd.f32 %v1733_v5, %v1401_v21 }
 0x173   :  { %v1754_v56 = vadd.f32 %v1430_v22, %v1428_v41  ;;  %v1775_v53 = vadd.f32 %v1431_v46, %v1429_v43  ;;  %v1151_v0 = vpop.permute.xlu1 %1150 }
 0x174   :  { %v1432_v36 = vmul.f32 %v1151_v0, %v640_v47  ;;  %v1433_v15 = vmul.f32 %v1151_v0, %v641_v50  ;;  %v1021_v10 = vpop.permute.xlu0 %1020  ;;  %v295_v0 = vld [vmem:[#allocation2 + $0x558] sm:$0xff] }
 0x175   :  { %v1370_v2 = vmul.f32 %v1021_v10, %v578_v24  ;;  %v1371_v45 = vmul.f32 %v1021_v10, %v579_v30 }
 0x176   :  { %v3101_v33 = vadd.f32 %v1754_v56, %v1432_v36  ;;  %v3103_v5 = vadd.f32 %v1775_v53, %v1433_v15  ;;  %v294_v53 = vld [vmem:[#allocation2 + $0x550] sm:$0xff]  ;;  %v296_v36 = vld [vmem:[#allocation2 + $0x560] sm:$0xff]  ;;  %v297_v15 = vld [vmem:[#allocation2 + $0x568] sm:$0xff] }
 0x177   :  { %v1672_v55 = vadd.f32 %v1671_v51, %v1370_v2  ;;  %v1693_v8 = vadd.f32 %v1692_v34, %v1371_v45  ;;  %v1025_v63 = vpop.permute.xlu1 %1024  ;;  %v328_v2 = vld [vmem:[#allocation2 + $0x660] sm:$0xff]  ;;  %v329_v45 = vld [vmem:[#allocation2 + $0x668] sm:$0xff] }
 0x178   :  { %v1372_v14 = vmul.f32 %v1025_v63, %v580_v40  ;;  %v1373_v59 = vmul.f32 %v1025_v63, %v581_v12  ;;  %v1088_v44 = vpop.permute.xlu0 %1087  ;;  %v326_v40 = vld [vmem:[#allocation2 + $0x650] sm:$0xff]  ;;  %v327_v12 = vld [vmem:[#allocation2 + $0x658] sm:$0xff]  ;;  %v3134_v63 = vmul.f32 %v3033_v1, %v324_v58  ;;  %v3151_v58 = vmul.f32 %v3043_v42, %v357_v54 }
 0x179   :  { %v1402_v61 = vmul.f32 %v1088_v44, %v610_v27  ;;  %v1403_v47 = vmul.f32 %v1088_v44, %v611_v7  ;;  %v358_v27 = vld [vmem:[#allocation2 + $0x750] sm:$0xff]  ;;  %v359_v7 = vld [vmem:[#allocation2 + $0x758] sm:$0xff]  ;;  %v3165_v1 = vmul.f32 %v3053_v9, %v297_v15  ;;  %v3168_v54 = vmul.f32 %v3036_v32, %v326_v40  ;;  %v364_v15 = vld [vmem:[#allocation2 + $0x780] sm:$0xff] }
 0x17a   :  { %v3105_v50 = vadd.f32 %v1672_v55, %v1372_v14  ;;  %v3107_v37 = vadd.f32 %v1693_v8, %v1373_v59  ;;  %v360_v55 = vld [vmem:[#allocation2 + $0x760] sm:$0xff]  ;;  %v361_v8 = vld [vmem:[#allocation2 + $0x768] sm:$0xff]  ;;  %v3137_v14 = vmul.f32 %v3043_v42, %v325_v20  ;;  %v298_v59 = vld [vmem:[#allocation2 + $0x570] sm:$0xff] }
 0x17b   :  { %v3109_v21 = vadd.f32 %v1713_v16, %v1402_v61  ;;  %v3111_v18 = vadd.f32 %v1734_v28, %v1403_v47  ;;  %v3113_v24 = vpop.permute.xlu1 %1091  ;;  %v354_v16 = vld [vmem:[#allocation2 + $0x730] sm:$0xff]  ;;  %v355_v28 = vld [vmem:[#allocation2 + $0x738] sm:$0xff]  ;;  %v268_v20 = vld [vmem:[#allocation2 + $0x480] sm:$0xff]  ;;  %3831 = vst [vmem:[#allocation58_spill] sm:$0xff] %v3165_v1  ;;  %v3183_v1 = vmul.f32 %v3039_v49, %v359_v7  ;;  %v3186_v40 = vmul.f32 %v3046_v6, %v360_v55 }
 0x17c   :  { %3822 = vst [vmem:[#allocation54_spill] sm:$0xff] %v3105_v50  ;;  %3823 = vst [vmem:[#allocation30_spill] sm:$0xff] %v3107_v37  ;;  %v3115_v30 = vpop.permute.xlu0 %1154  ;;  %v299_v44 = vld [vmem:[#allocation2 + $0x578] sm:$0xff]  ;;  %v330_v61 = vld [vmem:[#allocation2 + $0x670] sm:$0xff]  ;;  %v3142_v57 = vmul.f32 %v3025_v13, %v354_v16  ;;  %v3145_v31 = vmul.f32 %v3028_v23, %v355_v28  ;;  %v3159_v13 = vmul.f32 %v3039_v49, %v295_v0 }
 0x17d   :  { %v331_v47 = vld [vmem:[#allocation2 + $0x678] sm:$0xff]  ;;  %v3162_v23 = vmul.f32 %v3046_v6, %v296_v36  ;;  %v300_v42 = vld [vmem:[#allocation2 + $0x580] sm:$0xff]  ;;  %v301_v16 = vld [vmem:[#allocation2 + $0x588] sm:$0xff]  ;;  %v3177_v0 = vmul.f32 %v3053_v9, %v329_v45  ;;  %3834 = vst [vmem:[#allocation56_spill] sm:$0xff] %v3183_v1 }
 0x17e   :  { %v332_v28 = vld [vmem:[#allocation2 + $0x680] sm:$0xff]  ;;  %v270_v36 = vld [vmem:[#allocation2 + $0x490] sm:$0xff]  ;;  %v271_v37 = vld [vmem:[#allocation2 + $0x498] sm:$0xff]  ;;  %3835 = vst [vmem:[#allocation63_spill] sm:$0xff] %v3186_v40 }
 0x17f   :  { %v3117_v51 = vpop.permute.xlu1 %1158  ;;  %3830 = vst [vmem:[#allocation34_spill] sm:$0xff] %v3162_v23  ;;  %3833 = vst [vmem:[#allocation33_spill] sm:$0xff] %v3177_v0  ;;  %v365_v50 = vld [vmem:[#allocation2 + $0x788] sm:$0xff]  ;;  %v302_v45 = vld [vmem:[#allocation2 + $0x590] sm:$0xff]  ;;  %v3194_v23 = vmul.f32 %v3050_v17, %v298_v59 }
 0x180   :  { %v3119_v34 = vpop.permute.xlu0 %1028  ;;  %v303_v0 = vld [vmem:[#allocation2 + $0x598] sm:$0xff]  ;;  %v273_v7 = vld [vmem:[#allocation2 + $0x4a8] sm:$0xff]  ;;  %v366_v55 = vld [vmem:[#allocation2 + $0x790] sm:$0xff] }
 0x181   :  { %3838 = vst [vmem:[#allocation59_spill] sm:$0xff] %v3194_v23  ;;  %v2029_v59 = vld [vmem:[#allocation7 + $0x88] sm:$0xff] }
 0x182   :  { %v3209_v23 = vmul.f32 %v2029_v59, %v269_v26  ;;  %v3219_v40 = vmul.f32 %v2029_v59, %v301_v16  ;;  %v274_v26 = vld [vmem:[#allocation2 + $0x4b0] sm:$0xff]  ;;  %v3235_v16 = vmul.f32 %v2029_v59, %v365_v50  ;;  %v276_v50 = vld [vmem:[#allocation2 + $0x4c0] sm:$0xff] }
 0x183   :  { %v3121_v41 = vpop.permute.xlu1 %1032 }
 0x184   :  { %3824 = vst [vmem:[#allocation26_spill] sm:$0xff] %v3121_v41  ;;  %v3123_v43 = vpop.permute.xlu0 %1095  ;;  %v335_v41 = vld [vmem:[#allocation2 + $0x698] sm:$0xff]  ;;  %3844 = vst [vmem:[#allocation62_spill] sm:$0xff] %v3209_v23 }
 0x185   :  { %3846 = vst [vmem:[#allocation17_spill] sm:$0xff] %v3219_v40  ;;  %v275_v23 = vld [vmem:[#allocation2 + $0x4b8] sm:$0xff]  ;;  %3850 = vst [vmem:[#allocation71_spill] sm:$0xff] %v3235_v16  ;;  %v3255_v16 = vmul.f32 %v2948_v52, %v273_v7 }
 0x187   :  { %v3125_v22 = vpop.permute.xlu1 %1099 }
 0x188   :  { %3825 = vst [vmem:[#allocation51_spill] sm:$0xff] %v3125_v22  ;;  %v3127_v46 = vpop.permute.xlu0 %1162  ;;  %v3180_v22 = vmul.f32 %v3036_v32, %v358_v27  ;;  %v272_v27 = vld [vmem:[#allocation2 + $0x4a0] sm:$0xff] }
 0x18b   :  { %v3129_v56 = vpop.permute.xlu1 %1166 }
 0x18c   :  { %3826 = vst [vmem:[#allocation24_spill] sm:$0xff] %v3129_v56  ;;  %v3131_v10 = vpop.permute.xlu0 %1036  ;;  %v363_v56 = vld [vmem:[#allocation2 + $0x778] sm:$0xff] }
 0x18d   :  { %3827 = vst [vmem:[#allocation52_spill] sm:$0xff] %v3131_v10  ;;  %v362_v10 = vld [vmem:[#allocation2 + $0x770] sm:$0xff] }
 0x18f   :  { %v3139_v38 = vpop.permute.xlu1 %1103 }
 0x190   :  { %3828 = vst [vmem:[#allocation28_spill] sm:$0xff] %v3139_v38  ;;  %v3153_v29 = vpop.permute.xlu0 %973  ;;  %v3156_v38 = vmul.f32 %v3036_v32, %v294_v53  ;;  %v3174_v53 = vmul.f32 %v3046_v6, %v328_v2  ;;  %v3197_v32 = vmul.f32 %v3056_v60, %v299_v44  ;;  %v3203_v6 = vmul.f32 %v3056_v60, %v331_v47  ;;  %v304_v47 = vld [vmem:[#allocation2 + $0x5a0] sm:$0xff] }
 0x191   :  { %3829 = vst [vmem:[#allocation57_spill] sm:$0xff] %v3153_v29  ;;  %v3171_v29 = vmul.f32 %v3039_v49, %v327_v12  ;;  %v3189_v12 = vmul.f32 %v3053_v9, %v361_v8  ;;  %v3200_v49 = vmul.f32 %v3050_v17, %v330_v61  ;;  %v367_v8 = vld [vmem:[#allocation2 + $0x798] sm:$0xff]  ;;  %v3212_v44 = vmul.f32 %v3050_v17, %v362_v10  ;;  %v369_v17 = vld [vmem:[#allocation2 + $0x7a8] sm:$0xff] }
 0x192   :  { %3832 = vst [vmem:[#allocation55_spill] sm:$0xff] %v3174_v53  ;;  %v334_v53 = vld [vmem:[#allocation2 + $0x690] sm:$0xff]  ;;  %3839 = vst [vmem:[#allocation46_spill] sm:$0xff] %v3197_v32  ;;  %v3215_v61 = vmul.f32 %v3056_v60, %v363_v56  ;;  %v3228_v60 = vmul.f32 %v2928_v48, %v270_v36  ;;  %v3231_v56 = vmul.f32 %v2933_v35, %v271_v37 }
 0x193   :  { %3836 = vst [vmem:[#allocation47_spill] sm:$0xff] %v3189_v12  ;;  %v3191_v2 = vpop.permute.xlu1 %1170  ;;  %3840 = vst [vmem:[#allocation60_spill] sm:$0xff] %v3200_v49  ;;  %v336_v49 = vld [vmem:[#allocation2 + $0x6a0] sm:$0xff]  ;;  %v3246_v36 = vmul.f32 %v2928_v48, %v334_v53  ;;  %v3249_v37 = vmul.f32 %v2933_v35, %v335_v41  ;;  %v371_v53 = vld [vmem:[#allocation2 + $0x7b8] sm:$0xff]  ;;  %v3264_v41 = vmul.f32 %v2945_v3, %v304_v47 }
 0x194   :  { %3837 = vst [vmem:[#allocation64_spill] sm:$0xff] %v3191_v2  ;;  %3841 = vst [vmem:[#allocation40_spill] sm:$0xff] %v3203_v6  ;;  %v3205_v9 = vpop.permute.xlu0 %1040  ;;  %v2028_v2 = vld [vmem:[#allocation7 + $0x80] sm:$0xff]  ;;  %v3281_v47 = vmul.f32 %v2960_v25, %v275_v23 }
 0x195   :  { %3842 = vst [vmem:[#allocation41_spill] sm:$0xff] %v3205_v9  ;;  %v3207_v12 = vmul.f32 %v2028_v2, %v268_v20  ;;  %v305_v6 = vld [vmem:[#allocation2 + $0x5a8] sm:$0xff]  ;;  %v3217_v32 = vmul.f32 %v2028_v2, %v300_v42  ;;  %v3221_v1 = vmul.f32 %v2028_v2, %v332_v28  ;;  %v3223_v20 = vmul.f32 %v2029_v59, %v333_v39  ;;  %v306_v28 = vld [vmem:[#allocation2 + $0x5b0] sm:$0xff] }
 0x196   :  { %v337_v9 = vld [vmem:[#allocation2 + $0x6a8] sm:$0xff]  ;;  %v3233_v42 = vmul.f32 %v2028_v2, %v364_v15  ;;  %v338_v39 = vld [vmem:[#allocation2 + $0x6b0] sm:$0xff]  ;;  %3852 = vst [vmem:[#allocation73_spill] sm:$0xff] %v3246_v36  ;;  %3853 = vst [vmem:[#allocation27_spill] sm:$0xff] %v3249_v37  ;;  %v3252_v59 = vmul.f32 %v2945_v3, %v272_v27  ;;  %v3267_v37 = vmul.f32 %v2948_v52, %v305_v6 }
 0x197   :  { %3843 = vst [vmem:[#allocation67_spill] sm:$0xff] %v3207_v12  ;;  %3845 = vst [vmem:[#allocation68_spill] sm:$0xff] %v3217_v32  ;;  %v368_v12 = vld [vmem:[#allocation2 + $0x7a0] sm:$0xff]  ;;  %v3225_v10 = vpop.permute.xlu1 %1107  ;;  %v3240_v32 = vmul.f32 %v2928_v48, %v302_v45  ;;  %v277_v15 = vld [vmem:[#allocation2 + $0x4c8] sm:$0xff]  ;;  %v3258_v45 = vmul.f32 %v2928_v48, %v366_v55  ;;  %v3270_v27 = vmul.f32 %v2945_v3, %v336_v49 }
 0x198   :  { %3847 = vst [vmem:[#allocation65_spill] sm:$0xff] %v3221_v1  ;;  %3848 = vst [vmem:[#allocation61_spill] sm:$0xff] %v3223_v20  ;;  %v307_v1 = vld [vmem:[#allocation2 + $0x5b8] sm:$0xff]  ;;  %v3237_v40 = vpop.permute.xlu0 %977  ;;  %v370_v2 = vld [vmem:[#allocation2 + $0x7b0] sm:$0xff]  ;;  %v3273_v7 = vmul.f32 %v2948_v52, %v337_v9  ;;  %v3284_v6 = vmul.f32 %v2945_v3, %v368_v12  ;;  %v3287_v49 = vmul.f32 %v2948_v52, %v369_v17 }
 0x199   :  { %3849 = vst [vmem:[#allocation66_spill] sm:$0xff] %v3225_v10  ;;  %v339_v20 = vld [vmem:[#allocation2 + $0x6b8] sm:$0xff]  ;;  %v3243_v10 = vmul.f32 %v2933_v35, %v303_v0  ;;  %3854 = vst [vmem:[#allocation69_spill] sm:$0xff] %v3258_v45  ;;  %v3261_v0 = vmul.f32 %v2933_v35, %v367_v8  ;;  %v308_v36 = vld [vmem:[#allocation2 + $0x5c0] sm:$0xff]  ;;  %v3278_v8 = vmul.f32 %v2957_v4, %v274_v26 }
 0x19a   :  { %3855 = vst [vmem:[#allocation72_spill] sm:$0xff] %v3264_v41  ;;  %3856 = vst [vmem:[#allocation70_spill] sm:$0xff] %v3267_v37  ;;  %v340_v48 = vld [vmem:[#allocation2 + $0x6c0] sm:$0xff]  ;;  %v341_v55 = vld [vmem:[#allocation2 + $0x6c8] sm:$0xff]  ;;  %v3292_v41 = vmul.f32 %v2957_v4, %v306_v28  ;;  %v3295_v26 = vmul.f32 %v2960_v25, %v307_v1  ;;  %v3298_v23 = vmul.f32 %v2957_v4, %v338_v39 }
 0x19b   :  { %3851 = vst [vmem:[#allocation74_spill] sm:$0xff] %v3243_v10  ;;  %v309_v10 = vld [vmem:[#allocation2 + $0x5c8] sm:$0xff]  ;;  %3857 = vst [vmem:[#allocation29_spill] sm:$0xff] %v3270_v27  ;;  %v278_v45 = vld [vmem:[#allocation2 + $0x4d0] sm:$0xff]  ;;  %v3275_v35 = vpop.permute.xlu1 %1174  ;;  %v3301_v3 = vmul.f32 %v2960_v25, %v339_v20  ;;  %v3310_v28 = vmul.f32 %v2957_v4, %v370_v2  ;;  %v3313_v1 = vmul.f32 %v2960_v25, %v371_v53 }
 0x19c   :  { %3858 = vst [vmem:[#allocation35_spill] sm:$0xff] %v3273_v7  ;;  %3859 = vst [vmem:[#allocation31_spill] sm:$0xff] %v3284_v6  ;;  %v279_v27 = vld [vmem:[#allocation2 + $0x4d8] sm:$0xff]  ;;  %v372_v9 = vld [vmem:[#allocation2 + $0x7c0] sm:$0xff]  ;;  %v3289_v37 = vpop.permute.xlu0 %1044  ;;  %v3307_v6 = vmul.f32 %v2980_v62, %v277_v15  ;;  %v3316_v20 = vmul.f32 %v2977_v19, %v308_v36  ;;  %v3325_v15 = vmul.f32 %v2980_v62, %v341_v55 }
 0x19d   :  { %3860 = vst [vmem:[#allocation32_spill] sm:$0xff] %v3287_v49  ;;  %v373_v7 = vld [vmem:[#allocation2 + $0x7c8] sm:$0xff]  ;;  %3861 = vst [vmem:[#allocation38_spill] sm:$0xff] %v3295_v26  ;;  %v310_v12 = vld [vmem:[#allocation2 + $0x5d0] sm:$0xff]  ;;  %v3304_v49 = vmul.f32 %v2977_v19, %v276_v50  ;;  %v3322_v50 = vmul.f32 %v2977_v19, %v340_v48 }
 0x19e   :  { %3862 = vst [vmem:[#allocation39_spill] sm:$0xff] %v3298_v23  ;;  %3863 = vst [vmem:[#allocation36_spill] sm:$0xff] %v3301_v3  ;;  %v311_v52 = vld [vmem:[#allocation2 + $0x5d8] sm:$0xff]  ;;  %v342_v17 = vld [vmem:[#allocation2 + $0x6d0] sm:$0xff]  ;;  %v3319_v3 = vmul.f32 %v2980_v62, %v309_v10  ;;  %v3336_v10 = vmul.f32 %v2977_v19, %v372_v9  ;;  %v3339_v48 = vmul.f32 %v2980_v62, %v373_v7 }
 0x19f   :  { %3864 = vst [vmem:[#allocation37_spill] sm:$0xff] %v3307_v6  ;;  %3865 = vst [vmem:[#allocation42_spill] sm:$0xff] %v3310_v28  ;;  %v343_v39 = vld [vmem:[#allocation2 + $0x6d8] sm:$0xff]  ;;  %v280_v23 = vld [vmem:[#allocation2 + $0x4e0] sm:$0xff]  ;;  %v3327_v25 = vpop.permute.xlu1 %1111 }
 0x1a0   :  { %3866 = vst [vmem:[#allocation43_spill] sm:$0xff] %v3313_v1  ;;  %v281_v26 = vld [vmem:[#allocation2 + $0x4e8] sm:$0xff]  ;;  %3867 = vst [vmem:[#allocation75_spill] sm:$0xff] %v3316_v20  ;;  %v374_v4 = vld [vmem:[#allocation2 + $0x7d0] sm:$0xff] }
 0x1a1   :  { %3868 = vst [vmem:[#allocation76_spill] sm:$0xff] %v3319_v3  ;;  %3869 = vst [vmem:[#allocation77_spill] sm:$0xff] %v3322_v50  ;;  %v375_v2 = vld [vmem:[#allocation2 + $0x7d8] sm:$0xff]  ;;  %v312_v28 = vld [vmem:[#allocation2 + $0x5e0] sm:$0xff]  ;;  %v3341_v3 = vpop.permute.xlu0 %981 }
 0x1a2   :  { %3870 = vst [vmem:[#allocation78_spill] sm:$0xff] %v3325_v15  ;;  %v3871_v53 = vld [vmem:[#allocation18_spill] sm:$0xff]  ;;  %v3872_v6 = vld [vmem:[#allocation44_spill] sm:$0xff]  ;;  %3875 = vst [vmem:[#allocation79_spill] sm:$0xff] %v3339_v48 }
 0x1a3   :  { %v3330_v1 = vmul.f32 %v3871_v53, %v278_v45  ;;  %v3333_v36 = vmul.f32 %v3872_v6, %v279_v27  ;;  %3874 = vst [vmem:[#allocation44_spill] sm:$0xff] %v3336_v10  ;;  %v313_v50 = vld [vmem:[#allocation2 + $0x5e8] sm:$0xff]  ;;  %v344_v55 = vld [vmem:[#allocation2 + $0x6e0] sm:$0xff]  ;;  %v3344_v20 = vmul.f32 %v3871_v53, %v310_v12  ;;  %v3347_v45 = vmul.f32 %v3872_v6, %v311_v52  ;;  %v282_v9 = vld [vmem:[#allocation2 + $0x4f0] sm:$0xff] }
 0x1a4   :  { %v345_v15 = vld [vmem:[#allocation2 + $0x6e8] sm:$0xff]  ;;  %v3350_v27 = vmul.f32 %v3871_v53, %v342_v17  ;;  %v3353_v19 = vmul.f32 %v3872_v6, %v343_v39  ;;  %v283_v62 = vld [vmem:[#allocation2 + $0x4f8] sm:$0xff]  ;;  %v3879_v7 = vld [vmem:[#allocation21_spill] sm:$0xff]  ;;  %v3362_v12 = vmul.f32 %v3871_v53, %v374_v4  ;;  %v3365_v52 = vmul.f32 %v3872_v6, %v375_v2 }
 0x1a5   :  { %3873 = vst [vmem:[#allocation18_spill] sm:$0xff] %v3333_v36  ;;  %3876 = vst [vmem:[#allocation80_spill] sm:$0xff] %v3347_v45  ;;  %v3356_v48 = vmul.f32 %v3879_v7, %v280_v23  ;;  %v3880_v10 = vld [vmem:[#allocation45_spill] sm:$0xff]  ;;  %v376_v45 = vld [vmem:[#allocation2 + $0x7e0] sm:$0xff]  ;;  %v3374_v23 = vmul.f32 %v3879_v7, %v344_v55  ;;  %v1434_v6 = vmul.f32 %v3115_v30, %v3142_v57 }
 0x1a6   :  { %3877 = vst [vmem:[#allocation81_spill] sm:$0xff] %v3350_v27  ;;  %3878 = vst [vmem:[#allocation82_spill] sm:$0xff] %v3353_v19  ;;  %v3359_v36 = vmul.f32 %v3880_v10, %v281_v26  ;;  %v377_v17 = vld [vmem:[#allocation2 + $0x7e8] sm:$0xff]  ;;  %v3368_v27 = vmul.f32 %v3879_v7, %v312_v28  ;;  %v3371_v39 = vmul.f32 %v3880_v10, %v313_v50  ;;  %v314_v19 = vld [vmem:[#allocation2 + $0x5f0] sm:$0xff]  ;;  %v3383_v28 = vpop.permute.xlu1 %1178 }
 0x1a7   :  { %3881 = vst [vmem:[#allocation21_spill] sm:$0xff] %v3362_v12  ;;  %3882 = vst [vmem:[#allocation45_spill] sm:$0xff] %v3365_v52  ;;  %v3377_v26 = vmul.f32 %v3880_v10, %v345_v15  ;;  %v315_v4 = vld [vmem:[#allocation2 + $0x5f8] sm:$0xff]  ;;  %v378_v53 = vld [vmem:[#allocation2 + $0x7f0] sm:$0xff]  ;;  %v1435_v2 = vmul.f32 %v3115_v30, %v3145_v31  ;;  %v1405_v57 = vmul.f32 %v3113_v24, %v3137_v14 }
 0x1a8   :  { %3883 = vst [vmem:[#allocation83_spill] sm:$0xff] %v3368_v27  ;;  %3884 = vst [vmem:[#allocation84_spill] sm:$0xff] %v3371_v39  ;;  %v3887_v52 = vld [vmem:[#allocation19_spill] sm:$0xff]  ;;  %v346_v15 = vld [vmem:[#allocation2 + $0x6f0] sm:$0xff]  ;;  %v1404_v39 = vmul.f32 %v3113_v24, %v3134_v63  ;;  %v3395_v27 = vpop.permute.xlu0 %1048  ;;  %v3398_v31 = vmul.f32 %v3879_v7, %v376_v45  ;;  %v3401_v30 = vmul.f32 %v3880_v10, %v377_v17 }
 0x1a9   :  { %3885 = vst [vmem:[#allocation85_spill] sm:$0xff] %v3374_v23  ;;  %3886 = vst [vmem:[#allocation86_spill] sm:$0xff] %v3377_v26  ;;  %v3386_v50 = vmul.f32 %v3887_v52, %v282_v9  ;;  %v3888_v12 = vld [vmem:[#allocation23_spill] sm:$0xff]  ;;  %v379_v23 = vld [vmem:[#allocation2 + $0x7f8] sm:$0xff]  ;;  %v1436_v9 = vmul.f32 %v3117_v51, %v3148_v11  ;;  %v3414_v24 = vmul.f32 %v3887_v52, %v378_v53 }
 0x1aa   :  { %v3389_v55 = vmul.f32 %v3888_v12, %v283_v62  ;;  %v347_v26 = vld [vmem:[#allocation2 + $0x6f8] sm:$0xff]  ;;  %3890 = vst [vmem:[#allocation23_spill] sm:$0xff] %v3401_v30  ;;  %v1437_v62 = vmul.f32 %v3117_v51, %v3151_v58  ;;  %v3411_v63 = vmul.f32 %v3888_v12, %v315_v4  ;;  %v3417_v14 = vmul.f32 %v3888_v12, %v379_v23  ;;  %v3431_v7 = vpop.permute.xlu1 %1115 }
 0x1ab   :  { %3893 = vst [vmem:[#allocation89_spill] sm:$0xff] %v3414_v24  ;;  %v3420_v10 = vmul.f32 %v3887_v52, %v346_v15  ;;  %v3423_v11 = vmul.f32 %v3888_v12, %v347_v26  ;;  %v1756_v51 = vadd.f32 %v3101_v33, %v1434_v6  ;;  %v1777_v58 = vadd.f32 %v3103_v5, %v1435_v2  ;;  %v3898_v4 = vld [vmem:[#allocation34_spill] sm:$0xff]  ;;  %v3902_v6 = vld [vmem:[#allocation51_spill] sm:$0xff]  ;;  %v3914_v24 = vld [vmem:[#allocation40_spill] sm:$0xff] }
 0x1ac   :  { %3889 = vst [vmem:[#allocation19_spill] sm:$0xff] %v3389_v55  ;;  %v3408_v55 = vmul.f32 %v3887_v52, %v314_v19  ;;  %3892 = vst [vmem:[#allocation88_spill] sm:$0xff] %v3411_v63  ;;  %v1374_v45 = vmul.f32 %v3119_v34, %v3156_v38  ;;  %v1375_v19 = vmul.f32 %v3119_v34, %v3159_v13  ;;  %v3439_v23 = vpop.permute.xlu0 %985  ;;  %v3897_v34 = vld [vmem:[#allocation56_spill] sm:$0xff]  ;;  %v3904_v15 = vld [vmem:[#allocation54_spill] sm:$0xff] }
 0x1ad   :  { %3894 = vst [vmem:[#allocation90_spill] sm:$0xff] %v3417_v14  ;;  %3895 = vst [vmem:[#allocation91_spill] sm:$0xff] %v3420_v10  ;;  %v1715_v17 = vadd.f32 %v3109_v21, %v1404_v39  ;;  %v1736_v52 = vadd.f32 %v3111_v18, %v1405_v57  ;;  %v1406_v12 = vmul.f32 %v3123_v43, %v3168_v54  ;;  %v3899_v21 = vld [vmem:[#allocation26_spill] sm:$0xff]  ;;  %v3901_v54 = vld [vmem:[#allocation55_spill] sm:$0xff] }
 0x1ae   :  { %3891 = vst [vmem:[#allocation87_spill] sm:$0xff] %v3408_v55  ;;  %3896 = vst [vmem:[#allocation92_spill] sm:$0xff] %v3423_v11  ;;  %v1407_v33 = vmul.f32 %v3123_v43, %v3171_v29  ;;  %v1757_v5 = vadd.f32 %v1756_v51, %v1436_v9  ;;  %v1778_v26 = vadd.f32 %v1777_v58, %v1437_v62  ;;  %v3900_v18 = vld [vmem:[#allocation58_spill] sm:$0xff]  ;;  %v3903_v29 = vld [vmem:[#allocation33_spill] sm:$0xff] }
 0x1af   :  { %v1438_v38 = vmul.f32 %v3127_v46, %v3180_v22  ;;  %v1439_v13 = vmul.f32 %v3127_v46, %v3897_v34  ;;  %v1376_v39 = vmul.f32 %v3899_v21, %v3898_v4  ;;  %v1377_v53 = vmul.f32 %v3899_v21, %v3900_v18  ;;  %v3905_v9 = vld [vmem:[#allocation30_spill] sm:$0xff]  ;;  %v3906_v22 = vld [vmem:[#allocation63_spill] sm:$0xff]  ;;  %v3907_v51 = vld [vmem:[#allocation24_spill] sm:$0xff]  ;;  %v3459_v4 = vpop.permute.xlu1 %1182 }
 0x1b0   :  { %v1408_v2 = vmul.f32 %v3902_v6, %v3901_v54  ;;  %v1409_v43 = vmul.f32 %v3902_v6, %v3903_v29  ;;  %v1674_v57 = vadd.f32 %v3904_v15, %v1374_v45  ;;  %v1695_v62 = vadd.f32 %v3905_v9, %v1375_v19  ;;  %v3908_v46 = vld [vmem:[#allocation47_spill] sm:$0xff]  ;;  %v3910_v10 = vld [vmem:[#allocation52_spill] sm:$0xff]  ;;  %v3911_v14 = vld [vmem:[#allocation46_spill] sm:$0xff]  ;;  %v3465_v29 = vpop.permute.xlu0 %1052 }
 0x1b1   :  { %v1440_v58 = vmul.f32 %v3907_v51, %v3906_v22  ;;  %v1441_v34 = vmul.f32 %v3907_v51, %v3908_v46  ;;  %v1716_v11 = vadd.f32 %v1715_v17, %v1406_v12  ;;  %v1737_v21 = vadd.f32 %v1736_v52, %v1407_v33  ;;  %v3909_v18 = vld [vmem:[#allocation59_spill] sm:$0xff]  ;;  %v3912_v15 = vld [vmem:[#allocation60_spill] sm:$0xff]  ;;  %v3916_v55 = vld [vmem:[#allocation57_spill] sm:$0xff] }
 0x1b2   :  { %v1378_v54 = vmul.f32 %v3910_v10, %v3909_v18  ;;  %v1379_v6 = vmul.f32 %v3910_v10, %v3911_v14  ;;  %v1758_v45 = vadd.f32 %v1757_v5, %v1438_v38  ;;  %v1779_v19 = vadd.f32 %v1778_v26, %v1439_v13  ;;  %v3913_v9 = vld [vmem:[#allocation28_spill] sm:$0xff]  ;;  %v3915_v18 = vld [vmem:[#allocation67_spill] sm:$0xff]  ;;  %v3917_v14 = vld [vmem:[#allocation62_spill] sm:$0xff] }
 0x1b3   :  { %v1410_v22 = vmul.f32 %v3913_v9, %v3912_v15  ;;  %v1411_v51 = vmul.f32 %v3913_v9, %v3914_v24  ;;  %v1675_v46 = vadd.f32 %v1674_v57, %v1376_v39  ;;  %v1696_v63 = vadd.f32 %v1695_v62, %v1377_v53  ;;  %v3475_v5 = vpop.permute.xlu1 %1119  ;;  %v3918_v13 = vld [vmem:[#allocation64_spill] sm:$0xff]  ;;  %v3921_v62 = vld [vmem:[#allocation17_spill] sm:$0xff] }
 0x1b4   :  { %v1717_v17 = vadd.f32 %v1716_v11, %v1408_v2  ;;  %v1738_v52 = vadd.f32 %v1737_v21, %v1409_v43  ;;  %v1759_v12 = vadd.f32 %v1758_v45, %v1440_v58  ;;  %v1780_v33 = vadd.f32 %v1779_v19, %v1441_v34  ;;  %v3481_v11 = vpop.permute.xlu0 %989  ;;  %v3919_v2 = vld [vmem:[#allocation68_spill] sm:$0xff]  ;;  %v3920_v43 = vld [vmem:[#allocation41_spill] sm:$0xff]  ;;  %v3923_v34 = vld [vmem:[#allocation66_spill] sm:$0xff] }
 0x1b5   :  { %v1348_v30 = vmul.f32 %v3916_v55, %v3915_v18  ;;  %v1349_v10 = vmul.f32 %v3916_v55, %v3917_v14  ;;  %v1676_v26 = vadd.f32 %v1675_v46, %v1378_v54  ;;  %v1697_v38 = vadd.f32 %v1696_v63, %v1379_v6  ;;  %v3922_v58 = vld [vmem:[#allocation65_spill] sm:$0xff]  ;;  %v3925_v6 = vld [vmem:[#allocation22_spill] sm:$0xff] }
 0x1b6   :  { %v1442_v15 = vmul.f32 %v3918_v13, %v3212_v44  ;;  %v1443_v24 = vmul.f32 %v3918_v13, %v3215_v61  ;;  %v1718_v39 = vadd.f32 %v1717_v17, %v1410_v22  ;;  %v1739_v53 = vadd.f32 %v1738_v52, %v1411_v51  ;;  %v3924_v63 = vld [vmem:[#allocation61_spill] sm:$0xff]  ;;  %v3927_v51 = vld [vmem:[#allocation71_spill] sm:$0xff] }
 0x1b7   :  { %v1380_v57 = vmul.f32 %v3920_v43, %v3919_v2  ;;  %v1381_v55 = vmul.f32 %v3920_v43, %v3921_v62  ;;  %v1412_v21 = vmul.f32 %v3923_v34, %v3922_v58  ;;  %v1413_v54 = vmul.f32 %v3923_v34, %v3924_v63  ;;  %v3926_v19 = vld [vmem:[#allocation49_spill] sm:$0xff]  ;;  %v1187_v17 = vpop.permute.xlu1 %1186  ;;  %v3930_v43 = vld [vmem:[#allocation27_spill] sm:$0xff] }
 0x1b8   :  { %v1350_v44 = vmul.f32 %v3237_v40, %v3228_v60  ;;  %v1351_v61 = vmul.f32 %v3237_v40, %v3231_v56  ;;  %v1635_v45 = vadd.f32 %v3925_v6, %v1348_v30  ;;  %v1656_v9 = vadd.f32 %v3926_v19, %v1349_v10  ;;  %v3928_v60 = vld [vmem:[#allocation74_spill] sm:$0xff]  ;;  %v1057_v40 = vpop.permute.xlu0 %1056  ;;  %v3929_v2 = vld [vmem:[#allocation73_spill] sm:$0xff]  ;;  %v3936_v19 = vld [vmem:[#allocation31_spill] sm:$0xff] }
 0x1b9   :  { %v1444_v22 = vmul.f32 %v3275_v35, %v3233_v42  ;;  %v1445_v46 = vmul.f32 %v3275_v35, %v3927_v51  ;;  %v1760_v52 = vadd.f32 %v1759_v12, %v1442_v15  ;;  %v1781_v18 = vadd.f32 %v1780_v33, %v1443_v24 }
 0x1ba   :  { %v1382_v14 = vmul.f32 %v3289_v37, %v3240_v32  ;;  %v1383_v13 = vmul.f32 %v3289_v37, %v3928_v60  ;;  %v1677_v56 = vadd.f32 %v1676_v26, %v1380_v57  ;;  %v1698_v30 = vadd.f32 %v1697_v38, %v1381_v55  ;;  %v3931_v57 = vld [vmem:[#allocation69_spill] sm:$0xff] }
 0x1bb   :  { %v1414_v10 = vmul.f32 %v3327_v25, %v3929_v2  ;;  %v1415_v42 = vmul.f32 %v3327_v25, %v3930_v43  ;;  %v1719_v62 = vadd.f32 %v1718_v39, %v1412_v21  ;;  %v1740_v35 = vadd.f32 %v1739_v53, %v1413_v54  ;;  %v1124_v26 = vpop.permute.xlu1 %1123  ;;  %v3932_v21 = vld [vmem:[#allocation72_spill] sm:$0xff]  ;;  %v3933_v54 = vld [vmem:[#allocation70_spill] sm:$0xff] }
 0x1bc   :  { %v1636_v58 = vadd.f32 %v1635_v45, %v1350_v44  ;;  %v1657_v12 = vadd.f32 %v1656_v9, %v1351_v61  ;;  %v1761_v33 = vadd.f32 %v1760_v52, %v1444_v22  ;;  %v1782_v15 = vadd.f32 %v1781_v18, %v1445_v46  ;;  %v994_v39 = vpop.permute.xlu0 %993  ;;  %v3934_v44 = vld [vmem:[#allocation29_spill] sm:$0xff]  ;;  %v3937_v22 = vld [vmem:[#allocation32_spill] sm:$0xff]  ;;  %v3938_v18 = vld [vmem:[#allocation38_spill] sm:$0xff] }
 0x1bd   :  { %v1352_v32 = vmul.f32 %v3341_v3, %v3252_v59  ;;  %v1353_v37 = vmul.f32 %v3341_v3, %v3255_v16  ;;  %v1678_v38 = vadd.f32 %v1677_v56, %v1382_v14  ;;  %v1699_v24 = vadd.f32 %v1698_v30, %v1383_v13  ;;  %v3935_v3 = vld [vmem:[#allocation35_spill] sm:$0xff]  ;;  %v3940_v56 = vld [vmem:[#allocation36_spill] sm:$0xff] }
 0x1be   :  { %v1446_v55 = vmul.f32 %v3383_v28, %v3931_v57  ;;  %v1447_v25 = vmul.f32 %v3383_v28, %v3261_v0  ;;  %v1720_v53 = vadd.f32 %v1719_v62, %v1414_v10  ;;  %v1741_v34 = vadd.f32 %v1740_v35, %v1415_v42  ;;  %v3941_v35 = vld [vmem:[#allocation37_spill] sm:$0xff] }
 0x1bf   :  { %v1384_v63 = vmul.f32 %v3395_v27, %v3932_v21  ;;  %v1385_v59 = vmul.f32 %v3395_v27, %v3933_v54  ;;  %v1416_v16 = vmul.f32 %v3431_v7, %v3934_v44  ;;  %v1417_v61 = vmul.f32 %v3431_v7, %v3935_v3  ;;  %v1191_v51 = vpop.permute.xlu1 %1190  ;;  %v3946_v21 = vld [vmem:[#allocation77_spill] sm:$0xff] }
 0x1c0   :  { %v1354_v6 = vmul.f32 %v3439_v23, %v3278_v8  ;;  %v1355_v0 = vmul.f32 %v3439_v23, %v3281_v47  ;;  %v1637_v28 = vadd.f32 %v1636_v58, %v1352_v32  ;;  %v1658_v45 = vadd.f32 %v1657_v12, %v1353_v37  ;;  %v1061_v14 = vpop.permute.xlu0 %1060  ;;  %v3939_v23 = vld [vmem:[#allocation39_spill] sm:$0xff] }
 0x1c1   :  { %v1448_v9 = vmul.f32 %v3459_v4, %v3936_v19  ;;  %v1449_v27 = vmul.f32 %v3459_v4, %v3937_v22  ;;  %v1762_v46 = vadd.f32 %v1761_v33, %v1446_v55  ;;  %v1783_v52 = vadd.f32 %v1782_v15, %v1447_v25  ;;  %v3942_v15 = vld [vmem:[#allocation42_spill] sm:$0xff]  ;;  %v3943_v37 = vld [vmem:[#allocation43_spill] sm:$0xff] }
 0x1c2   :  { %v1386_v7 = vmul.f32 %v3465_v29, %v3292_v41  ;;  %v1387_v8 = vmul.f32 %v3465_v29, %v3938_v18  ;;  %v1679_v60 = vadd.f32 %v1678_v38, %v1384_v63  ;;  %v1700_v47 = vadd.f32 %v1699_v24, %v1385_v59  ;;  %v3944_v55 = vld [vmem:[#allocation75_spill] sm:$0xff]  ;;  %v3948_v59 = vld [vmem:[#allocation18_spill] sm:$0xff] }
 0x1c3   :  { %v1418_v13 = vmul.f32 %v3475_v5, %v3939_v23  ;;  %v1419_v30 = vmul.f32 %v3475_v5, %v3940_v56  ;;  %v1721_v2 = vadd.f32 %v1720_v53, %v1416_v16  ;;  %v1742_v4 = vadd.f32 %v1741_v34, %v1417_v61  ;;  %v1128_v58 = vpop.permute.xlu1 %1127  ;;  %v3945_v53 = vld [vmem:[#allocation76_spill] sm:$0xff] }
 0x1c4   :  { %v1638_v10 = vadd.f32 %v1637_v28, %v1354_v6  ;;  %v1659_v43 = vadd.f32 %v1658_v45, %v1355_v0  ;;  %v1763_v42 = vadd.f32 %v1762_v46, %v1448_v9  ;;  %v1784_v62 = vadd.f32 %v1783_v52, %v1449_v27  ;;  %v998_v5 = vpop.permute.xlu0 %997  ;;  %v3949_v61 = vld [vmem:[#allocation44_spill] sm:$0xff] }
 0x1c5   :  { %v1356_v41 = vmul.f32 %v3481_v11, %v3304_v49  ;;  %v1357_v29 = vmul.f32 %v3481_v11, %v3941_v35  ;;  %v1680_v12 = vadd.f32 %v1679_v60, %v1386_v7  ;;  %v1701_v33 = vadd.f32 %v1700_v47, %v1387_v8  ;;  %v3947_v49 = vld [vmem:[#allocation78_spill] sm:$0xff]  ;;  %v3952_v47 = vld [vmem:[#allocation81_spill] sm:$0xff] }
 0x1c6   :  { %v1450_v32 = vmul.f32 %v1187_v17, %v3942_v15  ;;  %v1451_v38 = vmul.f32 %v1187_v17, %v3943_v37  ;;  %v1722_v24 = vadd.f32 %v1721_v2, %v1418_v13  ;;  %v1743_v57 = vadd.f32 %v1742_v4, %v1419_v30  ;;  %v3950_v17 = vld [vmem:[#allocation79_spill] sm:$0xff]  ;;  %v3953_v13 = vld [vmem:[#allocation82_spill] sm:$0xff] }
 0x1c7   :  { %v1388_v25 = vmul.f32 %v1057_v40, %v3944_v55  ;;  %v1389_v34 = vmul.f32 %v1057_v40, %v3945_v53  ;;  %v1420_v63 = vmul.f32 %v1124_v26, %v3946_v21  ;;  %v1421_v54 = vmul.f32 %v1124_v26, %v3947_v49  ;;  %v1195_v28 = vpop.permute.xlu1 %1194  ;;  %v3951_v40 = vld [vmem:[#allocation80_spill] sm:$0xff]  ;;  %v3954_v2 = vld [vmem:[#allocation83_spill] sm:$0xff]  ;;  %v3960_v37 = vld [vmem:[#allocation86_spill] sm:$0xff] }
 0x1c8   :  { %v1358_v11 = vmul.f32 %v994_v39, %v3330_v1  ;;  %v1359_v44 = vmul.f32 %v994_v39, %v3948_v59  ;;  %v1639_v16 = vadd.f32 %v1638_v10, %v1356_v41  ;;  %v1660_v3 = vadd.f32 %v1659_v43, %v1357_v29  ;;  %v1065_v27 = vpop.permute.xlu0 %1064  ;;  %v3955_v10 = vld [vmem:[#allocation84_spill] sm:$0xff]  ;;  %v3956_v41 = vld [vmem:[#allocation19_spill] sm:$0xff]  ;;  %v3957_v29 = vld [vmem:[#allocation21_spill] sm:$0xff] }
 0x1c9   :  { %v1452_v6 = vmul.f32 %v1191_v51, %v3949_v61  ;;  %v1453_v0 = vmul.f32 %v1191_v51, %v3950_v17  ;;  %v1764_v45 = vadd.f32 %v1763_v42, %v1450_v32  ;;  %v1785_v19 = vadd.f32 %v1784_v62, %v1451_v38  ;;  %v3959_v32 = vld [vmem:[#allocation85_spill] sm:$0xff]  ;;  %v3962_v59 = vld [vmem:[#allocation87_spill] sm:$0xff] }
 0x1ca   :  { %v1390_v9 = vmul.f32 %v1061_v14, %v3344_v20  ;;  %v1391_v22 = vmul.f32 %v1061_v14, %v3951_v40  ;;  %v1681_v46 = vadd.f32 %v1680_v12, %v1388_v25  ;;  %v1702_v26 = vadd.f32 %v1701_v33, %v1389_v34  ;;  %v3958_v33 = vld [vmem:[#allocation45_spill] sm:$0xff] }
 0x1cb   :  { %v1360_v1 = vmul.f32 %v998_v5, %v3356_v48  ;;  %v1361_v39 = vmul.f32 %v998_v5, %v3359_v36  ;;  %v1723_v52 = vadd.f32 %v1722_v24, %v1420_v63  ;;  %v1744_v7 = vadd.f32 %v1743_v57, %v1421_v54  ;;  %v1132_v20 = vpop.permute.xlu1 %1131 }
 0x1cc   :  { %v1640_v18 = vadd.f32 %v1639_v16, %v1358_v11  ;;  %v1661_v8 = vadd.f32 %v1660_v3, %v1359_v44  ;;  %v1765_v60 = vadd.f32 %v1764_v45, %v1452_v6  ;;  %v1786_v51 = vadd.f32 %v1785_v19, %v1453_v0  ;;  %v1002_v48 = vpop.permute.xlu0 %1001  ;;  %v3963_v16 = vld [vmem:[#allocation88_spill] sm:$0xff] }
 0x1cd   :  { %v1422_v23 = vmul.f32 %v1128_v58, %v3952_v47  ;;  %v1423_v56 = vmul.f32 %v1128_v58, %v3953_v13  ;;  %v1682_v30 = vadd.f32 %v1681_v46, %v1390_v9  ;;  %v1703_v14 = vadd.f32 %v1702_v26, %v1391_v22  ;;  %v3965_v26 = vld [vmem:[#allocation90_spill] sm:$0xff]  ;;  %v3966_v47 = vld [vmem:[#allocation91_spill] sm:$0xff]  ;;  %v3967_v13 = vld [vmem:[#allocation92_spill] sm:$0xff] }
 0x1ce   :  { %v1392_v4 = vmul.f32 %v1065_v27, %v3954_v2  ;;  %v1393_v43 = vmul.f32 %v1065_v27, %v3955_v10  ;;  %v1641_v42 = vadd.f32 %v1640_v18, %v1360_v1  ;;  %v1662_v36 = vadd.f32 %v1661_v8, %v1361_v39  ;;  %v3964_v27 = vld [vmem:[#allocation89_spill] sm:$0xff] }
 0x1cf   :  { %v1362_v62 = vmul.f32 %v1002_v48, %v3386_v50  ;;  %v1363_v35 = vmul.f32 %v1002_v48, %v3956_v41  ;;  %v1454_v12 = vmul.f32 %v1195_v28, %v3957_v29  ;;  %v1455_v15 = vmul.f32 %v1195_v28, %v3958_v33  ;;  %v1199_v25 = vpop.permute.xlu1 %1198  ;;  %v3961_v50 = vld [vmem:[#allocation23_spill] sm:$0xff] }
 0x1d0   :  { %v1424_v58 = vmul.f32 %v1132_v20, %v3959_v32  ;;  %v1425_v38 = vmul.f32 %v1132_v20, %v3960_v37  ;;  %v1724_v5 = vadd.f32 %v1723_v52, %v1422_v23  ;;  %v1745_v24 = vadd.f32 %v1744_v7, %v1423_v56  ;;  %v1069_v49 = vpop.permute.xlu0 %1068 }
 0x1d1   :  { %v1642_v57 = vadd.f32 %v1641_v42, %v1362_v62  ;;  %v1663_v55 = vadd.f32 %v1662_v36, %v1363_v35  ;;  %v1683_v53 = vadd.f32 %v1682_v30, %v1392_v4  ;;  %v1704_v34 = vadd.f32 %v1703_v14, %v1393_v43 }
 0x1d2   :  { %v1456_v21 = vmul.f32 %v1199_v25, %v3398_v31  ;;  %v1457_v63 = vmul.f32 %v1199_v25, %v3961_v50  ;;  %v1394_v44 = vmul.f32 %v1069_v49, %v3962_v59  ;;  %v1395_v3 = vmul.f32 %v1069_v49, %v3963_v16  ;;  %v1908_v16 = vld [vmem:[%s3612_s5] sm:$0x3] }
 0x1d3   :  { %v1643_v54 = vrot.slane %v1642_v57, 4  ;;  %v1664_v11 = vrot.slane %v1663_v55, 4  ;;  %v1766_v61 = vadd.f32 %v1765_v60, %v1454_v12  ;;  %v1787_v6 = vadd.f32 %v1786_v51, %v1455_v15  ;;  %v1203_v40 = vpop.permute.xlu1 %1202 }
 0x1d4   :  { %v1725_v17 = vadd.f32 %v1724_v5, %v1424_v58  ;;  %v1746_v0 = vadd.f32 %v1745_v24, %v1425_v38  ;;  %v1684_v19 = vadd.f32 %v1683_v53, %v1394_v44  ;;  %v1705_v9 = vadd.f32 %v1704_v34, %v1395_v3  ;;  %v1136_v39 = vpop.permute.xlu0 %1135  ;;  %v3968_v53 = vld [vmem:[#allocation50_spill] sm:$0xff] }
 0x1d5   :  { %v1644_v28 = vadd.f32 %v1643_v54, %v1642_v57  ;;  %v1665_v45 = vadd.f32 %v1664_v11, %v1663_v55  ;;  %v1767_v31 = vadd.f32 %v1766_v61, %v1456_v21  ;;  %v1788_v22 = vadd.f32 %v1787_v6, %v1457_v63  ;;  %v3969_v21 = vld [vmem:[#allocation48_spill] sm:$0xff] }
 0x1d6   :  { %v1458_v46 = vmul.f32 %v1203_v40, %v3964_v27  ;;  %v1459_v1 = vmul.f32 %v1203_v40, %v3965_v26  ;;  %v1685_v18 = vrot.slane %v1684_v19, 4  ;;  %v1706_v8 = vrot.slane %v1705_v9, 4 }
 0x1d7   :  { %v1645_v52 = vrot.slane %v1644_v28, 2  ;;  %v1666_v7 = vrot.slane %v1665_v45, 2  ;;  %v1426_v23 = vmul.f32 %v1136_v39, %v3966_v47  ;;  %v1427_v56 = vmul.f32 %v1136_v39, %v3967_v13  ;;  %v3972_v13 = vld [vmem:[#allocation53_spill] sm:$0xff] }
 0x1d8   :  { %v1768_v60 = vadd.f32 %v1767_v31, %v1458_v46  ;;  %v1789_v51 = vadd.f32 %v1788_v22, %v1459_v1  ;;  %v1686_v14 = vadd.f32 %v1685_v18, %v1684_v19  ;;  %v1707_v2 = vadd.f32 %v1706_v8, %v1705_v9  ;;  %v3970_v9 = vld [vmem:[#allocation16_spill] sm:$0xff]  ;;  %v1907_v1 = vld [vmem:[#allocation10 + $0x8] sm:$0xff] }
 0x1d9   :  { %v1646_v20 = vadd.f32 %v1645_v52, %v1644_v28  ;;  %v1667_v30 = vadd.f32 %v1666_v7, %v1665_v45  ;;  %v1726_v43 = vadd.f32 %v1725_v17, %v1426_v23  ;;  %v1747_v48 = vadd.f32 %v1746_v0, %v1427_v56  ;;  %v3971_v31 = vld [vmem:[#allocation20_spill] sm:$0xff]  ;;  %v1924_v7 = vld [vmem:[%s3613_s6] sm:$0x3]  ;;  %s2140_s6 = scalar_lea.vmem %s1947_s14, 256 }
 0x1da   :  { %v1769_v4 = vrot.slane %v1768_v60, 4  ;;  %v1790_v10 = vrot.slane %v1789_v51, 4  ;;  %v1687_v62 = vrot.slane %v1686_v14, 2  ;;  %v1708_v41 = vrot.slane %v1707_v2, 2  ;;  %v1906_v46 = vld [vmem:[#allocation10] sm:$0xff]  ;;  %p2141_p12 = scmp.ne.s32.totalorder %s1947_s14, %s2140_s6  ;;  %p2146_p0 = scmp.lt.s32.totalorder %s2140_s6, %s2140_s6 }
 0x1db   :  { %v1647_v42 = vrot.slane %v1646_v20, 1  ;;  %v1668_v36 = vrot.slane %v1667_v30, 1  ;;  %v1727_v12 = vrot.slane %v1726_v43, 4  ;;  %v1748_v33 = vrot.slane %v1747_v48, 4 }
 0x1dc   :  { %v1770_v35 = vadd.f32 %v1769_v4, %v1768_v60  ;;  %v1791_v29 = vadd.f32 %v1790_v10, %v1789_v51  ;;  %v1688_v58 = vadd.f32 %v1687_v62, %v1686_v14  ;;  %v1709_v37 = vadd.f32 %v1708_v41, %v1707_v2  ;;  %p2147_p1 = por %p2146_p0, %p2145_p13 }
 0x1dd   :  { %v1648_v15 = vadd.f32 %v1647_v42, %v1646_v20  ;;  %v1669_v32 = vadd.f32 %v1668_v36, %v1667_v30  ;;  %v1728_v24 = vadd.f32 %v1727_v12, %v1726_v43  ;;  %v1749_v57 = vadd.f32 %v1748_v33, %v1747_v48  ;;  %v3973_v30 = vld [vmem:[#allocation25_spill] sm:$0xff] }
 0x1de   :  { %v1771_v38 = vrot.slane %v1770_v35, 2  ;;  %v1792_v5 = vrot.slane %v1791_v29, 2  ;;  %v1689_v55 = vrot.slane %v1688_v58, 1  ;;  %v1710_v25 = vrot.slane %v1709_v37, 1  ;;  %p2148_p2 = pnand %p2147_p1, %p2141_p12 }
 0x1df   :  { %v1819_v34 = vsel %vm1818_vm3, %v1648_v15, %v3968_v53  ;;  %v1829_v50 = vsel %vm1818_vm3, %v1669_v32, %v3969_v21  ;;  %v1729_v54 = vrot.slane %v1728_v24, 2  ;;  %v1750_v11 = vrot.slane %v1749_v57, 2 }
 0x1e0   :  { %v1772_v63 = vadd.f32 %v1771_v38, %v1770_v35  ;;  %v1793_v49 = vadd.f32 %v1792_v5, %v1791_v29  ;;  %v1690_v59 = vadd.f32 %v1689_v55, %v1688_v58  ;;  %v1711_v44 = vadd.f32 %v1710_v25, %v1709_v37 }
 0x1e1   :  { %v1730_v3 = vadd.f32 %v1729_v54, %v1728_v24  ;;  %v1751_v61 = vadd.f32 %v1750_v11, %v1749_v57  ;;  %v1913_v40 = vrot.slane %v1908_v16, %v3970_v9  ;;  %v1917_v22 = vrot.slane %v1908_v16, %v3971_v31 }
 0x1e2   :  { %v1773_v6 = vrot.slane %v1772_v63, 1  ;;  %v1794_v17 = vrot.slane %v1793_v49, 1  ;;  %v1821_v0 = vsel %vm1820_vm4, %v1690_v59, %v1819_v34  ;;  %v1830_v28 = vsel %vm1820_vm4, %v1711_v44, %v1829_v50 }
 0x1e3   :  { %v1731_v45 = vrot.slane %v1730_v3, 1  ;;  %v1752_v19 = vrot.slane %v1751_v61, 1  ;;  %v1920_v8 = vmul.f32 %v1913_v40, %v1906_v46  ;;  %v1921_v51 = vmul.f32 %v1917_v22, %v1907_v1 }
 0x1e4   :  { %v1774_v27 = vadd.f32 %v1773_v6, %v1772_v63  ;;  %v1795_v26 = vadd.f32 %v1794_v17, %v1793_v49  ;;  %v1929_v20 = vrot.slane %v1924_v7, %v3970_v9  ;;  %v1933_v2 = vrot.slane %v1924_v7, %v3971_v31 }
 0x1e5   :  { %v1732_v39 = vadd.f32 %v1731_v45, %v1730_v3  ;;  %v1753_v52 = vadd.f32 %v1752_v19, %v1751_v61 }
 0x1e7   :  { %v1823_v18 = vsel %vm1822_vm5, %v1732_v39, %v1821_v0  ;;  %v1831_v60 = vsel %vm1822_vm5, %v1753_v52, %v1830_v28 }
 0x1e8   :  { %v1825_v47 = vsel %vm1824_vm6, %v1774_v27, %v1823_v18  ;;  %v1832_v23 = vsel %vm1824_vm6, %v1795_v26, %v1831_v60 }
 0x1e9   :  { %v1902_v56 = vadd.f32 %v3972_v13, %v1825_v47  ;;  %v1904_v14 = vadd.f32 %v3973_v30, %v1832_v23 }
 0x1eb   :  { %v1922_v4 = vadd.f32 %v1920_v8, %v1902_v56  ;;  %v1923_v10 = vadd.f32 %v1921_v51, %v1904_v14 }
 0x1ed   :  { %v1936_v43 = vadd.f32 %v1929_v20, %v1922_v4  ;;  %v1937_v48 = vadd.f32 %v1933_v2, %v1923_v10 }
 0x1ef   :  { %1938 = vst [vmem:[#allocation11] sm:$0xff] %v1936_v43  ;;  %1939 = vst [vmem:[#allocation11 + $0x8] sm:$0xff] %v1937_v48 }
 0x1f0   :  { %2151 = shalt.err (!%p2148_p2)
}
 0x1f1   :  { %s2152_s18 = scalar_lea.hbm %s3614_s7, 256 }
 0x1f2   :  { %p2153_p3 = scmp.ne.s32.totalorder %s3614_s7, %s2152_s18  ;;  %p2156_p4 = scmp.lt.u32.totalorder %s2152_s18, %s3614_s7 }
 0x1f4   :  { %p2158_p5 = pnand %p2156_p4, %p2153_p3 }
 0x1f6   :  { %2161 = shalt.err (!%p2158_p5)
}
 0x1f7   :  { %1949 = dma.vmem_to_hbm [thread:$0]  %s1947_s14, 256, %s3614_s7, [#allocation4]  }
 0x1f8   :  { %2168 = dma.done.wait [#allocation4], 256  }
 0x1f9   :  { %2169 = vsyncadd [#allocation4], 4294967040 }
 0x1fa   :  { %1953 = vsyncpa [#allocation3], 1 }
 0x1fb   :  { %1954 = vsyncpa [#allocation6], 1 }
 0x1fc   :  { %1955 = vsyncpa [#allocation9], 1 }
 0x1fd   :  { %1956 = vsyncpa [#allocation4], 1 }

</bundles_post_ra>
